<compile_context>
chip_gen: v5e
topology: v5e:2x2
jax: 0.10.0
libtpu: 0.0.40
codegen_flags: <defaults>
</compile_context>

<pallas_src>
import functools

import jax
import jax.numpy as jnp
from jax.experimental import pallas as pl
from jax.experimental.pallas import tpu as pltpu


# Zero-guard width (lanes) separating/padding the flattened images inside the
# VMEM scratch.  128 keeps every interior/guard store lane-aligned;
# correctness only needs guard >= pad_h*W + pad_w (= 17 for 3x3 on W=16) and
# guard % W == 0 (so one shared `lane % W` column mask covers every image).
_GUARD = 128


def _fused_recon_kernel(x_ref, wg1_ref, b1_ref, wg2_ref, b2_ref, o_ref,
                        xext_ref, hext_ref, *, N, H, W, KH, KW):
    """Whole forward pass (both conv layers, all batch elements) in one step.

    x_ref  : (N, Cin,  H*W)  flattened NCHW input (VMEM)
    wg*_ref: (KW, Cout, KH*Cin) per-horizontal-tap grouped weights
    b*_ref : (Cout, 1) biases
    o_ref  : (N, Cout, H*W)  flattened NCHW output (lane-dense stores)
    xext/hext: (C, N*(H*W+_GUARD)+_GUARD) zero-guarded extended buffers
    """
    HW = H * W
    pad_h, pad_w = KH // 2, KW // 2
    stride = HW + _GUARD                   # per-image pitch in extended buffer
    NL = N * HW + (N - 1) * _GUARD         # conv-output window width (lanes)

    chid = hext_ref.shape[0]
    cout = o_ref.shape[1]

    # ---- one-time setup ------------------------------------------------------
    # Zero only the N+1 guard/gap regions (lane-aligned 128-wide stores); the
    # image interiors are always fully overwritten below.
    for ref in (xext_ref, hext_ref):
        for g in range(N + 1):
            s = g * stride
            ref[:, s:s + _GUARD] = jnp.zeros((ref.shape[0], _GUARD), jnp.float32)

    # Column wrap masks per horizontal offset, computed once, shared by both
    # layers.  Image bases are multiples of W, so `lane % W` is the in-row
    # column for every image region; the gap lanes are don't-care.
    col = jax.lax.broadcasted_iota(jnp.int32, (1, NL), 1) % W
    col_masks = {}
    for kw in range(KW):
        off = kw - pad_w
        if off != 0:
            ok = jnp.logical_and(col + off >= 0, col + off < W)
            col_masks[kw] = ok.astype(jnp.float32)

    def conv(ext_ref, wg_ref, b_ref, n_out):
        """Stride-1 'same' conv over the whole extended buffer.

        One matmul per horizontal tap offset (KW total): the KH vertical taps
        are stacked along the contraction dim.  The row-wrap mask is applied
        to the matmul output (n_out rows) -- valid because the mask is
        per-lane and broadcasts over the contraction dim.  Vertical
        out-of-range taps read the zero guards.  Accumulator is bias-seeded.
        """
        acc = jnp.broadcast_to(b_ref[...], (n_out, NL))
        for kw in range(KW):
            taps = [
                ext_ref[:, _GUARD + (kh - pad_h) * W + (kw - pad_w):
                        _GUARD + (kh - pad_h) * W + (kw - pad_w) + NL]
                for kh in range(KH)
            ]
            xs = jnp.concatenate(taps, axis=0)               # (KH*n_in, NL)
            part = jnp.dot(wg_ref[kw], xs,
                           preferred_element_type=jnp.float32)
            if kw in col_masks:                              # kill row wrap
                part = part * col_masks[kw]
            acc = acc + part
        return acc

    # ---- backbone: conv(Cin -> Chid) + bias + ReLU ---------------------------
    for n in range(N):                                       # unrolled (N small)
        base = _GUARD + n * stride
        xext_ref[:, base:base + HW] = x_ref[n].astype(jnp.float32)
    h = jnp.maximum(conv(xext_ref, wg1_ref, b1_ref, chid), 0.0)   # (Chid, NL)

    # ---- recon_backbone: conv(Chid -> Cout) + bias ---------------------------
    for n in range(N):
        base = _GUARD + n * stride
        hext_ref[:, base:base + HW] = h[:, n * stride:n * stride + HW]
    y = conv(hext_ref, wg2_ref, b2_ref, cout)                      # (Cout, NL)

    for n in range(N):
        o_ref[n] = y[:, n * stride:n * stride + HW].astype(o_ref.dtype)


def baseline_template_recon_forward(x_nchw, params):
    """BaselineTemplateReconModel.forward: recon_backbone(backbone(x)).

    Takes and returns PyTorch-style NCHW tensors; only free reshapes happen
    outside the single fused Pallas kernel.
    """
    (w1, b1), (w2, b2) = params
    N, Cin, H, W = x_nchw.shape
    KH, KW, Chid, _ = w1.shape
    Cout = w2.shape[2]
    HW = H * W
    assert HW % 128 == 0, "flattened spatial extent must be lane-aligned"
    assert (KH // 2) * W + KW // 2 <= _GUARD, "guard too small for this kernel"
    assert _GUARD % W == 0, "guard must keep image bases W-aligned for the mask"

    # Group weights per horizontal tap: (KW, Cout, KH*Cin), row = kh*Cin + cin.
    # (Input layout is (KH, KW, Cout, Cin) = PyTorch OIHW transposed (2,3,0,1).)
    wg1 = jnp.transpose(w1, (1, 2, 0, 3)).reshape(KW, Chid, KH * Cin)
    wg2 = jnp.transpose(w2, (1, 2, 0, 3)).reshape(KW, Cout, KH * Chid)

    ext_w = N * (HW + _GUARD) + _GUARD
    kernel = functools.partial(_fused_recon_kernel, N=N, H=H, W=W, KH=KH, KW=KW)
    vmem = pl.BlockSpec(memory_space=pltpu.MemorySpace.VMEM)

    # Single invocation (no grid): everything fits comfortably in VMEM at this
    # size; launch/mask/guard setup is paid exactly once.
    # TODO(synk): for much larger H*W or channel counts, add an H-band tiling
    # grid axis with a pad_h-row halo instead of growing the whole-image
    # scratch (v7x VMEM is half of v5e/v6e).
    out_flat = pl.pallas_call(
        kernel,
        out_shape=jax.ShapeDtypeStruct((N, Cout, HW), x_nchw.dtype),
        in_specs=[vmem, vmem, vmem, vmem, vmem],
        out_specs=vmem,
        scratch_shapes=[
            pltpu.VMEM((Cin, ext_w), jnp.float32),    # zero-guarded input
            pltpu.VMEM((Chid, ext_w), jnp.float32),   # zero-guarded hidden act.
        ],
    )(x_nchw.reshape(N, Cin, HW), wg1, b1, wg2, b2)

    return out_flat.reshape(N, Cout, H, W)


def init_params(key, c_in=4, c_hid=8, k=3):
    """Deterministic parameter init.

    Weight layout is (KH, KW, Cout, Cin) — i.e. PyTorch's OIHW conv weight
    transposed with (2, 3, 0, 1); biases are (Cout, 1).
    """
    k1, k2, k3, k4 = jax.random.split(key, 4)
    s1 = (2.0 / (k * k * c_in)) ** 0.5
    s2 = (2.0 / (k * k * c_hid)) ** 0.5
    w1 = jax.random.normal(k1, (k, k, c_hid, c_in), jnp.float32) * s1
    b1 = jax.random.normal(k2, (c_hid, 1), jnp.float32) * 0.01
    w2 = jax.random.normal(k3, (k, k, c_in, c_hid), jnp.float32) * s2
    b2 = jax.random.normal(k4, (c_in, 1), jnp.float32) * 0.01
    return (w1, b1), (w2, b2)


def _reference_forward(x_nchw, params):
    """Pure-JAX reference (lax conv, NCHW/OIHW like PyTorch)."""
    (w1, b1), (w2, b2) = params
    dn = ("NCHW", "OIHW", "NCHW")
    w1_oihw = jnp.transpose(w1, (2, 3, 0, 1))
    w2_oihw = jnp.transpose(w2, (2, 3, 0, 1))
    h = jax.lax.conv_general_dilated(x_nchw, w1_oihw, (1, 1), "SAME",
                                     dimension_numbers=dn)
    h = jnp.maximum(h + b1.reshape(1, -1, 1, 1), 0.0)
    y = jax.lax.conv_general_dilated(h, w2_oihw, (1, 1), "SAME",
                                     dimension_numbers=dn)
    return y + b2.reshape(1, -1, 1, 1)


if __name__ == "__main__":
    key = jax.random.PRNGKey(0)
    kx, kp = jax.random.split(key)

    # Small shapes consistent with the module: batch=2, channels=4, spatial=16.
    x = jax.random.normal(kx, (2, 4, 16, 16), jnp.float32)   # NCHW (PyTorch)
    params = init_params(kp, c_in=4, c_hid=8, k=3)

    out = jax.block_until_ready(baseline_template_recon_forward(x, params))
    ref = jax.block_until_ready(_reference_forward(x, params))

    assert out.shape == (2, 4, 16, 16), out.shape
    assert jnp.allclose(out, ref, atol=2e-4, rtol=2e-4), \
        float(jnp.max(jnp.abs(out - ref)))

    print("KERNEL_OK")
</pallas_src>

<mosaic_0001>
module attributes {stable_mosaic.version = 11 : i64} {
  func.func @_fused_recon_kernel(%arg0: memref<2x4x256xf32, #tpu.memory_space<vmem>>, %arg1: memref<3x8x12xf32, #tpu.memory_space<vmem>>, %arg2: memref<8x1xf32, #tpu.memory_space<vmem>>, %arg3: memref<3x4x24xf32, #tpu.memory_space<vmem>>, %arg4: memref<4x1xf32, #tpu.memory_space<vmem>>, %arg5: memref<2x4x256xf32, #tpu.memory_space<vmem>>, %arg6: memref<4x896xf32, #tpu.memory_space<vmem>>, %arg7: memref<8x896xf32, #tpu.memory_space<vmem>>) attributes {dimension_semantics = [], scalar_prefetch = 0 : i64, scratch_operands = 2 : i64, tpu.core_type = #tpu.core_type<tc>} {
    %cst = arith.constant 0.000000e+00 : f32
    %0 = vector.broadcast %cst : f32 to vector<4x128xf32>
    %c0 = arith.constant 0 : index
    %c0_0 = arith.constant 0 : index
    %1 = vector.load %arg6[%c0, %c0_0] : memref<4x896xf32, #tpu.memory_space<vmem>>, vector<4x128xf32>
    tpu.vector_store %arg6[%c0, %c0_0], %0 {strides = array<i32>} : memref<4x896xf32, #tpu.memory_space<vmem>>, vector<4x128xf32>,
    %cst_1 = arith.constant 0.000000e+00 : f32
    %2 = vector.broadcast %cst_1 : f32 to vector<4x128xf32>
    %c0_2 = arith.constant 0 : index
    %c384 = arith.constant 384 : index
    %3 = vector.load %arg6[%c0_2, %c384] : memref<4x896xf32, #tpu.memory_space<vmem>>, vector<4x128xf32>
    tpu.vector_store %arg6[%c0_2, %c384], %2 {strides = array<i32>} : memref<4x896xf32, #tpu.memory_space<vmem>>, vector<4x128xf32>,
    %cst_3 = arith.constant 0.000000e+00 : f32
    %4 = vector.broadcast %cst_3 : f32 to vector<4x128xf32>
    %c0_4 = arith.constant 0 : index
    %c768 = arith.constant 768 : index
    %5 = vector.load %arg6[%c0_4, %c768] : memref<4x896xf32, #tpu.memory_space<vmem>>, vector<4x128xf32>
    tpu.vector_store %arg6[%c0_4, %c768], %4 {strides = array<i32>} : memref<4x896xf32, #tpu.memory_space<vmem>>, vector<4x128xf32>,
    %cst_5 = arith.constant 0.000000e+00 : f32
    %6 = vector.broadcast %cst_5 : f32 to vector<8x128xf32>
    %c0_6 = arith.constant 0 : index
    %c0_7 = arith.constant 0 : index
    %7 = vector.load %arg7[%c0_6, %c0_7] : memref<8x896xf32, #tpu.memory_space<vmem>>, vector<8x128xf32>
    tpu.vector_store %arg7[%c0_6, %c0_7], %6 {strides = array<i32>} : memref<8x896xf32, #tpu.memory_space<vmem>>, vector<8x128xf32>,
    %cst_8 = arith.constant 0.000000e+00 : f32
    %8 = vector.broadcast %cst_8 : f32 to vector<8x128xf32>
    %c0_9 = arith.constant 0 : index
    %c384_10 = arith.constant 384 : index
    %9 = vector.load %arg7[%c0_9, %c384_10] : memref<8x896xf32, #tpu.memory_space<vmem>>, vector<8x128xf32>
    tpu.vector_store %arg7[%c0_9, %c384_10], %8 {strides = array<i32>} : memref<8x896xf32, #tpu.memory_space<vmem>>, vector<8x128xf32>,
    %cst_11 = arith.constant 0.000000e+00 : f32
    %10 = vector.broadcast %cst_11 : f32 to vector<8x128xf32>
    %c0_12 = arith.constant 0 : index
    %c768_13 = arith.constant 768 : index
    %11 = vector.load %arg7[%c0_12, %c768_13] : memref<8x896xf32, #tpu.memory_space<vmem>>, vector<8x128xf32>
    tpu.vector_store %arg7[%c0_12, %c768_13], %10 {strides = array<i32>} : memref<8x896xf32, #tpu.memory_space<vmem>>, vector<8x128xf32>,
    %12 = tpu.iota {dimensions = array<i32: 1>} : vector<1x640xi32>
    %c16_i32 = arith.constant 16 : i32
    %c0_i32 = arith.constant 0 : i32
    %13 = arith.cmpi eq, %c16_i32, %c0_i32 : i32
    %c1_i32 = arith.constant 1 : i32
    %14 = arith.select %13, %c1_i32, %c16_i32 : i32
    %15 = vector.broadcast %14 : i32 to vector<1x640xi32>
    %16 = arith.remsi %12, %15 : vector<1x640xi32>
    %c0_i32_14 = arith.constant 0 : i32
    %17 = vector.broadcast %c0_i32_14 : i32 to vector<1x640xi32>
    %18 = arith.cmpi ne, %16, %17 : vector<1x640xi32>
    %c0_i32_15 = arith.constant 0 : i32
    %19 = vector.broadcast %c0_i32_15 : i32 to vector<1x640xi32>
    %20 = arith.cmpi slt, %16, %19 : vector<1x640xi32>
    %c0_i32_16 = arith.constant 0 : i32
    %21 = arith.cmpi slt, %14, %c0_i32_16 : i32
    %22 = vector.broadcast %21 : i1 to vector<1x640xi1>
    %23 = vector.broadcast %22 : vector<1x640xi1> to vector<1x640xi1>
    %24 = arith.xori %20, %23 : vector<1x640xi1>
    %25 = arith.andi %24, %18 : vector<1x640xi1>
    %26 = vector.broadcast %14 : i32 to vector<1x640xi32>
    %27 = arith.addi %16, %26 : vector<1x640xi32>
    %28 = arith.select %25, %27, %16 : vector<1x640xi1>, vector<1x640xi32>
    %c-1_i32 = arith.constant -1 : i32
    %29 = vector.broadcast %c-1_i32 : i32 to vector<1x640xi32>
    %30 = arith.addi %28, %29 : vector<1x640xi32>
    %c0_i32_17 = arith.constant 0 : i32
    %31 = vector.broadcast %c0_i32_17 : i32 to vector<1x640xi32>
    %32 = arith.cmpi sge, %30, %31 : vector<1x640xi32>
    %c-1_i32_18 = arith.constant -1 : i32
    %33 = vector.broadcast %c-1_i32_18 : i32 to vector<1x640xi32>
    %34 = arith.addi %28, %33 : vector<1x640xi32>
    %c16_i32_19 = arith.constant 16 : i32
    %35 = vector.broadcast %c16_i32_19 : i32 to vector<1x640xi32>
    %36 = arith.cmpi slt, %34, %35 : vector<1x640xi32>
    %37 = arith.andi %32, %36 : vector<1x640xi1>
    %38 = arith.extui %37 : vector<1x640xi1> to vector<1x640xi32>
    %39 = arith.sitofp %38 : vector<1x640xi32> to vector<1x640xf32>
    %c1_i32_20 = arith.constant 1 : i32
    %40 = vector.broadcast %c1_i32_20 : i32 to vector<1x640xi32>
    %41 = arith.addi %28, %40 : vector<1x640xi32>
    %c0_i32_21 = arith.constant 0 : i32
    %42 = vector.broadcast %c0_i32_21 : i32 to vector<1x640xi32>
    %43 = arith.cmpi sge, %41, %42 : vector<1x640xi32>
    %c1_i32_22 = arith.constant 1 : i32
    %44 = vector.broadcast %c1_i32_22 : i32 to vector<1x640xi32>
    %45 = arith.addi %28, %44 : vector<1x640xi32>
    %c16_i32_23 = arith.constant 16 : i32
    %46 = vector.broadcast %c16_i32_23 : i32 to vector<1x640xi32>
    %47 = arith.cmpi slt, %45, %46 : vector<1x640xi32>
    %48 = arith.andi %43, %47 : vector<1x640xi1>
    %49 = arith.extui %48 : vector<1x640xi1> to vector<1x640xi32>
    %50 = arith.sitofp %49 : vector<1x640xi32> to vector<1x640xf32>
    %c0_24 = arith.constant 0 : index
    %c0_25 = arith.constant 0 : index
    %c0_26 = arith.constant 0 : index
    %51 = vector.load %arg0[%c0_24, %c0_25, %c0_26] : memref<2x4x256xf32, #tpu.memory_space<vmem>>, vector<1x4x256xf32>
    %52 = vector.shape_cast %51 : vector<1x4x256xf32> to vector<4x256xf32>
    %c0_27 = arith.constant 0 : index
    %c128 = arith.constant 128 : index
    %53 = vector.load %arg6[%c0_27, %c128] : memref<4x896xf32, #tpu.memory_space<vmem>>, vector<4x256xf32>
    tpu.vector_store %arg6[%c0_27, %c128], %52 {strides = array<i32>} : memref<4x896xf32, #tpu.memory_space<vmem>>, vector<4x256xf32>,
    %c1 = arith.constant 1 : index
    %c0_28 = arith.constant 0 : index
    %c0_29 = arith.constant 0 : index
    %54 = vector.load %arg0[%c1, %c0_28, %c0_29] : memref<2x4x256xf32, #tpu.memory_space<vmem>>, vector<1x4x256xf32>
    %55 = vector.shape_cast %54 : vector<1x4x256xf32> to vector<4x256xf32>
    %c0_30 = arith.constant 0 : index
    %c512 = arith.constant 512 : index
    %56 = vector.load %arg6[%c0_30, %c512] : memref<4x896xf32, #tpu.memory_space<vmem>>, vector<4x256xf32>
    tpu.vector_store %arg6[%c0_30, %c512], %55 {strides = array<i32>} : memref<4x896xf32, #tpu.memory_space<vmem>>, vector<4x256xf32>,
    %c0_31 = arith.constant 0 : index
    %c0_32 = arith.constant 0 : index
    %57 = vector.load %arg2[%c0_31, %c0_32] : memref<8x1xf32, #tpu.memory_space<vmem>>, vector<8x1xf32>
    %58 = vector.shape_cast %57 : vector<8x1xf32> to vector<8x1xf32>
    %59 = vector.broadcast %58 : vector<8x1xf32> to vector<8x640xf32>
    %c0_33 = arith.constant 0 : index
    %c111 = arith.constant 111 : index
    %60 = vector.load %arg6[%c0_33, %c111] : memref<4x896xf32, #tpu.memory_space<vmem>>, vector<4x640xf32>
    %c0_34 = arith.constant 0 : index
    %c127 = arith.constant 127 : index
    %61 = vector.load %arg6[%c0_34, %c127] : memref<4x896xf32, #tpu.memory_space<vmem>>, vector<4x640xf32>
    %c0_35 = arith.constant 0 : index
    %c143 = arith.constant 143 : index
    %62 = vector.load %arg6[%c0_35, %c143] : memref<4x896xf32, #tpu.memory_space<vmem>>, vector<4x640xf32>
    %63 = tpu.concatenate %60, %61, %62 in 0 : vector<4x640xf32>, vector<4x640xf32>, vector<4x640xf32> -> vector<12x640xf32>
    %c0_36 = arith.constant 0 : index
    %c0_37 = arith.constant 0 : index
    %c0_38 = arith.constant 0 : index
    %64 = vector.load %arg1[%c0_36, %c0_37, %c0_38] : memref<3x8x12xf32, #tpu.memory_space<vmem>>, vector<1x8x12xf32>
    %65 = vector.shape_cast %64 : vector<1x8x12xf32> to vector<8x12xf32>
    %cst_39 = arith.constant dense<0.000000e+00> : vector<8x640xf32>
    %66 = tpu.matmul %65, %63, %cst_39 {dimension_numbers = #tpu.dot_dimension_numbers<[1], [0], [0], [1], [0, 0, 1, 1], [], []>} : vector<8x12xf32>, vector<12x640xf32>, vector<8x640xf32> -> vector<8x640xf32>
    %67 = vector.broadcast %39 : vector<1x640xf32> to vector<8x640xf32>
    %68 = arith.mulf %66, %67 : vector<8x640xf32>
    %69 = arith.addf %59, %68 : vector<8x640xf32>
    %c0_40 = arith.constant 0 : index
    %c112 = arith.constant 112 : index
    %70 = vector.load %arg6[%c0_40, %c112] : memref<4x896xf32, #tpu.memory_space<vmem>>, vector<4x640xf32>
    %c0_41 = arith.constant 0 : index
    %c128_42 = arith.constant 128 : index
    %71 = vector.load %arg6[%c0_41, %c128_42] : memref<4x896xf32, #tpu.memory_space<vmem>>, vector<4x640xf32>
    %c0_43 = arith.constant 0 : index
    %c144 = arith.constant 144 : index
    %72 = vector.load %arg6[%c0_43, %c144] : memref<4x896xf32, #tpu.memory_space<vmem>>, vector<4x640xf32>
    %73 = tpu.concatenate %70, %71, %72 in 0 : vector<4x640xf32>, vector<4x640xf32>, vector<4x640xf32> -> vector<12x640xf32>
    %c1_44 = arith.constant 1 : index
    %c0_45 = arith.constant 0 : index
    %c0_46 = arith.constant 0 : index
    %74 = vector.load %arg1[%c1_44, %c0_45, %c0_46] : memref<3x8x12xf32, #tpu.memory_space<vmem>>, vector<1x8x12xf32>
    %75 = vector.shape_cast %74 : vector<1x8x12xf32> to vector<8x12xf32>
    %cst_47 = arith.constant dense<0.000000e+00> : vector<8x640xf32>
    %76 = tpu.matmul %75, %73, %cst_47 {dimension_numbers = #tpu.dot_dimension_numbers<[1], [0], [0], [1], [0, 0, 1, 1], [], []>} : vector<8x12xf32>, vector<12x640xf32>, vector<8x640xf32> -> vector<8x640xf32>
    %77 = arith.addf %69, %76 : vector<8x640xf32>
    %c0_48 = arith.constant 0 : index
    %c113 = arith.constant 113 : index
    %78 = vector.load %arg6[%c0_48, %c113] : memref<4x896xf32, #tpu.memory_space<vmem>>, vector<4x640xf32>
    %c0_49 = arith.constant 0 : index
    %c129 = arith.constant 129 : index
    %79 = vector.load %arg6[%c0_49, %c129] : memref<4x896xf32, #tpu.memory_space<vmem>>, vector<4x640xf32>
    %c0_50 = arith.constant 0 : index
    %c145 = arith.constant 145 : index
    %80 = vector.load %arg6[%c0_50, %c145] : memref<4x896xf32, #tpu.memory_space<vmem>>, vector<4x640xf32>
    %81 = tpu.concatenate %78, %79, %80 in 0 : vector<4x640xf32>, vector<4x640xf32>, vector<4x640xf32> -> vector<12x640xf32>
    %c2 = arith.constant 2 : index
    %c0_51 = arith.constant 0 : index
    %c0_52 = arith.constant 0 : index
    %82 = vector.load %arg1[%c2, %c0_51, %c0_52] : memref<3x8x12xf32, #tpu.memory_space<vmem>>, vector<1x8x12xf32>
    %83 = vector.shape_cast %82 : vector<1x8x12xf32> to vector<8x12xf32>
    %cst_53 = arith.constant dense<0.000000e+00> : vector<8x640xf32>
    %84 = tpu.matmul %83, %81, %cst_53 {dimension_numbers = #tpu.dot_dimension_numbers<[1], [0], [0], [1], [0, 0, 1, 1], [], []>} : vector<8x12xf32>, vector<12x640xf32>, vector<8x640xf32> -> vector<8x640xf32>
    %85 = vector.broadcast %50 : vector<1x640xf32> to vector<8x640xf32>
    %86 = arith.mulf %84, %85 : vector<8x640xf32>
    %87 = arith.addf %77, %86 : vector<8x640xf32>
    %cst_54 = arith.constant 0.000000e+00 : f32
    %88 = vector.broadcast %cst_54 : f32 to vector<8x640xf32>
    %89 = arith.maximumf %87, %88 : vector<8x640xf32>
    %90 = vector.extract_strided_slice %89 {offsets = [0, 0], sizes = [8, 256], strides = [1, 1]} : vector<8x640xf32> to vector<8x256xf32>
    %c0_55 = arith.constant 0 : index
    %c128_56 = arith.constant 128 : index
    %91 = vector.load %arg7[%c0_55, %c128_56] : memref<8x896xf32, #tpu.memory_space<vmem>>, vector<8x256xf32>
    tpu.vector_store %arg7[%c0_55, %c128_56], %90 {strides = array<i32>} : memref<8x896xf32, #tpu.memory_space<vmem>>, vector<8x256xf32>,
    %92 = vector.extract_strided_slice %89 {offsets = [0, 384], sizes = [8, 256], strides = [1, 1]} : vector<8x640xf32> to vector<8x256xf32>
    %c0_57 = arith.constant 0 : index
    %c512_58 = arith.constant 512 : index
    %93 = vector.load %arg7[%c0_57, %c512_58] : memref<8x896xf32, #tpu.memory_space<vmem>>, vector<8x256xf32>
    tpu.vector_store %arg7[%c0_57, %c512_58], %92 {strides = array<i32>} : memref<8x896xf32, #tpu.memory_space<vmem>>, vector<8x256xf32>,
    %c0_59 = arith.constant 0 : index
    %c0_60 = arith.constant 0 : index
    %94 = vector.load %arg4[%c0_59, %c0_60] : memref<4x1xf32, #tpu.memory_space<vmem>>, vector<4x1xf32>
    %95 = vector.shape_cast %94 : vector<4x1xf32> to vector<4x1xf32>
    %96 = vector.broadcast %95 : vector<4x1xf32> to vector<4x640xf32>
    %c0_61 = arith.constant 0 : index
    %c111_62 = arith.constant 111 : index
    %97 = vector.load %arg7[%c0_61, %c111_62] : memref<8x896xf32, #tpu.memory_space<vmem>>, vector<8x640xf32>
    %c0_63 = arith.constant 0 : index
    %c127_64 = arith.constant 127 : index
    %98 = vector.load %arg7[%c0_63, %c127_64] : memref<8x896xf32, #tpu.memory_space<vmem>>, vector<8x640xf32>
    %c0_65 = arith.constant 0 : index
    %c143_66 = arith.constant 143 : index
    %99 = vector.load %arg7[%c0_65, %c143_66] : memref<8x896xf32, #tpu.memory_space<vmem>>, vector<8x640xf32>
    %100 = tpu.concatenate %97, %98, %99 in 0 : vector<8x640xf32>, vector<8x640xf32>, vector<8x640xf32> -> vector<24x640xf32>
    %c0_67 = arith.constant 0 : index
    %c0_68 = arith.constant 0 : index
    %c0_69 = arith.constant 0 : index
    %101 = vector.load %arg3[%c0_67, %c0_68, %c0_69] : memref<3x4x24xf32, #tpu.memory_space<vmem>>, vector<1x4x24xf32>
    %102 = vector.shape_cast %101 : vector<1x4x24xf32> to vector<4x24xf32>
    %cst_70 = arith.constant dense<0.000000e+00> : vector<4x640xf32>
    %103 = tpu.matmul %102, %100, %cst_70 {dimension_numbers = #tpu.dot_dimension_numbers<[1], [0], [0], [1], [0, 0, 1, 1], [], []>} : vector<4x24xf32>, vector<24x640xf32>, vector<4x640xf32> -> vector<4x640xf32>
    %104 = vector.broadcast %39 : vector<1x640xf32> to vector<4x640xf32>
    %105 = arith.mulf %103, %104 : vector<4x640xf32>
    %106 = arith.addf %96, %105 : vector<4x640xf32>
    %c0_71 = arith.constant 0 : index
    %c112_72 = arith.constant 112 : index
    %107 = vector.load %arg7[%c0_71, %c112_72] : memref<8x896xf32, #tpu.memory_space<vmem>>, vector<8x640xf32>
    %c0_73 = arith.constant 0 : index
    %c128_74 = arith.constant 128 : index
    %108 = vector.load %arg7[%c0_73, %c128_74] : memref<8x896xf32, #tpu.memory_space<vmem>>, vector<8x640xf32>
    %c0_75 = arith.constant 0 : index
    %c144_76 = arith.constant 144 : index
    %109 = vector.load %arg7[%c0_75, %c144_76] : memref<8x896xf32, #tpu.memory_space<vmem>>, vector<8x640xf32>
    %110 = tpu.concatenate %107, %108, %109 in 0 : vector<8x640xf32>, vector<8x640xf32>, vector<8x640xf32> -> vector<24x640xf32>
    %c1_77 = arith.constant 1 : index
    %c0_78 = arith.constant 0 : index
    %c0_79 = arith.constant 0 : index
    %111 = vector.load %arg3[%c1_77, %c0_78, %c0_79] : memref<3x4x24xf32, #tpu.memory_space<vmem>>, vector<1x4x24xf32>
    %112 = vector.shape_cast %111 : vector<1x4x24xf32> to vector<4x24xf32>
    %cst_80 = arith.constant dense<0.000000e+00> : vector<4x640xf32>
    %113 = tpu.matmul %112, %110, %cst_80 {dimension_numbers = #tpu.dot_dimension_numbers<[1], [0], [0], [1], [0, 0, 1, 1], [], []>} : vector<4x24xf32>, vector<24x640xf32>, vector<4x640xf32> -> vector<4x640xf32>
    %114 = arith.addf %106, %113 : vector<4x640xf32>
    %c0_81 = arith.constant 0 : index
    %c113_82 = arith.constant 113 : index
    %115 = vector.load %arg7[%c0_81, %c113_82] : memref<8x896xf32, #tpu.memory_space<vmem>>, vector<8x640xf32>
    %c0_83 = arith.constant 0 : index
    %c129_84 = arith.constant 129 : index
    %116 = vector.load %arg7[%c0_83, %c129_84] : memref<8x896xf32, #tpu.memory_space<vmem>>, vector<8x640xf32>
    %c0_85 = arith.constant 0 : index
    %c145_86 = arith.constant 145 : index
    %117 = vector.load %arg7[%c0_85, %c145_86] : memref<8x896xf32, #tpu.memory_space<vmem>>, vector<8x640xf32>
    %118 = tpu.concatenate %115, %116, %117 in 0 : vector<8x640xf32>, vector<8x640xf32>, vector<8x640xf32> -> vector<24x640xf32>
    %c2_87 = arith.constant 2 : index
    %c0_88 = arith.constant 0 : index
    %c0_89 = arith.constant 0 : index
    %119 = vector.load %arg3[%c2_87, %c0_88, %c0_89] : memref<3x4x24xf32, #tpu.memory_space<vmem>>, vector<1x4x24xf32>
    %120 = vector.shape_cast %119 : vector<1x4x24xf32> to vector<4x24xf32>
    %cst_90 = arith.constant dense<0.000000e+00> : vector<4x640xf32>
    %121 = tpu.matmul %120, %118, %cst_90 {dimension_numbers = #tpu.dot_dimension_numbers<[1], [0], [0], [1], [0, 0, 1, 1], [], []>} : vector<4x24xf32>, vector<24x640xf32>, vector<4x640xf32> -> vector<4x640xf32>
    %122 = vector.broadcast %50 : vector<1x640xf32> to vector<4x640xf32>
    %123 = arith.mulf %121, %122 : vector<4x640xf32>
    %124 = arith.addf %114, %123 : vector<4x640xf32>
    %125 = vector.extract_strided_slice %124 {offsets = [0, 0], sizes = [4, 256], strides = [1, 1]} : vector<4x640xf32> to vector<4x256xf32>
    %c0_91 = arith.constant 0 : index
    %c0_92 = arith.constant 0 : index
    %c0_93 = arith.constant 0 : index
    %126 = vector.load %arg5[%c0_91, %c0_92, %c0_93] : memref<2x4x256xf32, #tpu.memory_space<vmem>>, vector<1x4x256xf32>
    %127 = vector.shape_cast %126 : vector<1x4x256xf32> to vector<4x256xf32>
    %128 = vector.shape_cast %125 : vector<4x256xf32> to vector<1x4x256xf32>
    tpu.vector_store %arg5[%c0_91, %c0_92, %c0_93], %128 {strides = array<i32>} : memref<2x4x256xf32, #tpu.memory_space<vmem>>, vector<1x4x256xf32>,
    %129 = vector.extract_strided_slice %124 {offsets = [0, 384], sizes = [4, 256], strides = [1, 1]} : vector<4x640xf32> to vector<4x256xf32>
    %c1_94 = arith.constant 1 : index
    %c0_95 = arith.constant 0 : index
    %c0_96 = arith.constant 0 : index
    %130 = vector.load %arg5[%c1_94, %c0_95, %c0_96] : memref<2x4x256xf32, #tpu.memory_space<vmem>>, vector<1x4x256xf32>
    %131 = vector.shape_cast %130 : vector<1x4x256xf32> to vector<4x256xf32>
    %132 = vector.shape_cast %129 : vector<4x256xf32> to vector<1x4x256xf32>
    tpu.vector_store %arg5[%c1_94, %c0_95, %c0_96], %132 {strides = array<i32>} : memref<2x4x256xf32, #tpu.memory_space<vmem>>, vector<1x4x256xf32>,
    return
  }
}

</mosaic_0001>

<bundles_post_ra>
// kernel: tpu_custom_call.1
= control target key start
LH: loop header
LB: loop body
LE: loop exit
PB: predicated region body
PF: predicated region fallthrough
CT: control target
= control target key end

     0   :  { %10 = vsyncpa [#allocation5], 0  ;;  %s2434_s0 = inlined_call_operand.hbm [shape: f32[2,4,256], index: 0, kind: input, shape index: {}]   ;;  %s2435_s1 = inlined_call_operand.hbm [shape: f32[3,8,12], index: 1, kind: input, shape index: {}]   ;;  %s2436_s2 = inlined_call_operand.vmem [shape: f32[8,1], index: 2, kind: input, shape index: {}]   ;;  %s2437_s3 = inlined_call_operand.vmem [shape: f32[3,4,24], index: 3, kind: input, shape index: {}]   ;;  %s2438_s4 = inlined_call_operand.vmem [shape: f32[4,1], index: 4, kind: input, shape index: {}]   ;;  %s2439_s5 = inlined_call_operand.hbm [shape: f32[2,4,256], index: 5, kind: output, shape index: {}]  }
   0x1   :  { %11 = vsyncpa [#allocation8], 0 }
   0x2   :  { %12 = vsyncpa [#allocation6], 0  ;;  %s17_s20 = sshll.u32 %s2434_s0, 4  ;;  %s1874_s21 = smov [#allocation4]   ;;  %s18_s20 = int_to_ptr.hbm [resolvable:$true] %s17_s20 }
   0x3   :  { %s19_s22 = sshll.u32 %s1874_s21, 4  ;;  %s30_s25 = sshll.u32 %s2435_s1, 4  ;;  %s20_s22 = int_to_ptr.vmem [resolvable:$true] %s19_s22  ;;  %s31_s25 = int_to_ptr.hbm [resolvable:$true] %s30_s25 }
   0x4   :  { %s1875_s26 = smov 128   ;;  %s1876_s27 = smov 8  }
   0x5   :  { %25 = dma.hbm_to_vmem [thread:$0]  %s18_s20, 256, %s20_s22, [#allocation5], %s1875_s26, %s1875_s26, %s1876_s27  }
   0x6   :  { %s1877_s28 = smov [#allocation7]  }
   0x7   :  { %s32_s29 = sshll.u32 %s1877_s28, 4  ;;  %s33_s29 = int_to_ptr.vmem [resolvable:$true] %s32_s29 }
   0x8   :  { %38 = dma.hbm_to_vmem [thread:$0]  %s31_s25, 384, %s33_s29, [#allocation8], %s1875_s26, %s1875_s26, %s1876_s27  }
   0x9   :  { %1868 = dma.done.wait [#allocation5], 256  }
   0xa   :  { %1869 = vsyncadd [#allocation5], 4294967040 }
   0xb   :  { %1870 = dma.done.wait [#allocation8], 384  }
   0xc   :  { %1871 = vsyncadd [#allocation8], 4294966912  ;;  %v1878_v0 = vmov 0.0   ;;  %v1931_v1 = vld [vmem:[#allocation4] sm:$0xff]  ;;  %v1933_v2 = vld [vmem:[#allocation4 + $0x8] sm:$0xff]  ;;  %s1879_s0 = smov 112  }
   0xd   :  { %53 = vst [vmem:[#allocation2] sm:$0xf] %v1878_v0  ;;  %s1880_s1 = smov 96   ;;  %vm221_vm0 = vcmask 916480   ;;  %vm265_vm1 = vcmask 1043456   ;;  %s1881_s30 = smov 17  }
   0xe   :  { %54 = vst [vmem:[#allocation2 + $0xc] sm:$0xf] %v1878_v0  ;;  %vm259_vm2 = vcmask 785408   ;;  %s1882_s6 = smov 16   ;;  %s1883_s7 = smov 15   ;;  %vm303_vm3 = vcmask 138240  }
   0xf   :  { %55 = vst [vmem:[#allocation2 + $0x18] sm:$0xf] %v1878_v0  ;;  %vm316_vm4 = vcmask 97280   ;;  %vm548_vm5 = vcmask 130048   ;;  %vm786_vm6 = vcmask 121856   ;;  %vm1031_vm15 = vcmask 195584  }
  0x10   :  { %161 = vst [vmem:[#allocation2 + $0x4] sm:$0xff] %v1931_v1  ;;  %s1461_s19 = sshll.u32 %s2439_s5, 4  ;;  %s1462_s19 = int_to_ptr.hbm [resolvable:$true] %s1461_s19 }
  0x11   :  { %164 = vst [vmem:[#allocation2 + $0x10] sm:$0xff] %v1933_v2 }
  0x12   :  { %184 = vst [vmem:[#allocation1 + $0x20] ss:$2 sm:$0xff] %v1933_v2 }
  0x17   :  { %v1938_v3 = vld [vmem:[#allocation2] sm:$0xff]  ;;  %v1940_v4 = vld [vmem:[#allocation2 + $0x8] sm:$0xff] }
  0x18   :  { %180 = vst [vmem:[#allocation1] ss:$2 sm:$0xff] %v1938_v3  ;;  %v1958_v11 = vld [vmem:[#allocation2 + $0x14] sm:$0xff]  ;;  %v1962_v14 = vld [vmem:[#allocation2 + $0xc] sm:$0xff] }
  0x19   :  { %182 = vst [vmem:[#allocation1 + $0x10] ss:$2 sm:$0xff] %v1940_v4  ;;  %v1944_v5 = vld.sshfl [vmem:[#allocation1 + $0x20] sm:$0xff pattern:$0x75316420] }
  0x1a   :  { %v1946_v6 = vld.sshfl [vmem:[#allocation1 + $0x28] sm:$0xff pattern:$0x75316420]  ;;  %v421_v25 = vld [vmem:[#allocation2 + $0x14] sm:$0xf] }
  0x1b   :  { %202 = vst [vmem:[#allocation1 + $0x21] ss:$2 sm:$0xff] %v1933_v2 }
  0x1f   :  { %v1949_v7 = vld.sshfl [vmem:[#allocation1] sm:$0xff pattern:$0x75316420]  ;;  %v1951_v8 = vld.sshfl [vmem:[#allocation1 + $0x8] sm:$0xff pattern:$0x75316420] }
  0x20   :  { %198 = vst [vmem:[#allocation1 + $0x1] ss:$2 sm:$0xff] %v1938_v3  ;;  %v1954_v9 = vld.sshfl [vmem:[#allocation1 + $0x10] sm:$0xff pattern:$0x75316420] }
  0x21   :  { %v1956_v10 = vld.sshfl [vmem:[#allocation1 + $0x18] sm:$0xff pattern:$0x75316420] }
  0x22   :  { %200 = vst [vmem:[#allocation1 + $0x11] ss:$2 sm:$0xff] %v1940_v4  ;;  %v207_v12 = vld.sshfl [vmem:[#allocation1 + $0x20] sm:$0xff pattern:$0x75316420] }
  0x23   :  { %v208_v13 = vld.sshfl [vmem:[#allocation1 + $0x28] sm:$0xff pattern:$0x75316420] }
  0x24   :  { %240 = vst [vmem:[#allocation1 + $0x20] ss:$2 sm:$0xff] %v1958_v11 }
  0x27   :  { %v203_v15 = vld.sshfl [vmem:[#allocation1] sm:$0xff pattern:$0x75316420]  ;;  %v204_v16 = vld.sshfl [vmem:[#allocation1 + $0x8] sm:$0xff pattern:$0x75316420] }
  0x28   :  { %v1538_v17 = vpack.i.bf16 %v204_v16, %v203_v15  ;;  %236 = vst [vmem:[#allocation1] ss:$2 sm:$0xff] %v1931_v1 }
  0x29   :  { %v1965_v18 = vld.sshfl [vmem:[#allocation1 + $0x10] sm:$0xff pattern:$0x75316420]  ;;  %v206_v19 = vld.sshfl [vmem:[#allocation1 + $0x18] sm:$0xff pattern:$0x75316420] }
  0x2a   :  { %1539 = vrot.lane.b32.xlu1 %v1538_v17, %s1879_s0  ;;  %238 = vst [vmem:[#allocation1 + $0x10] ss:$2 sm:$0xff] %v1962_v14  ;;  %v1533_v20 = vpack.i.bf16 %v207_v12, %v206_v19 }
  0x2b   :  { %v245_v21 = vld.sshfl [vmem:[#allocation1 + $0x20] sm:$0xff pattern:$0x75316420]  ;;  %v246_v22 = vld.sshfl [vmem:[#allocation1 + $0x28] sm:$0xff pattern:$0x75316420] }
  0x2c   :  { %1534 = vrot.lane.b32.xlu2 %v1533_v20, %s1879_s0  ;;  %432 = vst [vmem:[#allocation1 + $0x20] ss:$2 sm:$0xff] %v1933_v2 }
  0x2f   :  { %v241_v23 = vld.sshfl [vmem:[#allocation1] sm:$0xff pattern:$0x75316420]  ;;  %v242_v24 = vld.sshfl [vmem:[#allocation1 + $0x8] sm:$0xff pattern:$0x75316420] }
  0x30   :  { %428 = vst [vmem:[#allocation1] ss:$2 sm:$0xff] %v1938_v3 }
  0x31   :  { %v243_v26 = vld.sshfl [vmem:[#allocation1 + $0x10] sm:$0xff pattern:$0x75316420]  ;;  %v244_v27 = vld.sshfl [vmem:[#allocation1 + $0x18] sm:$0xff pattern:$0x75316420] }
  0x32   :  { %251 = vrot.lane.b32.xlu0 %v243_v26, %s1880_s1  ;;  %255 = vrot.lane.b32.xlu1 %v245_v21, %s1880_s1  ;;  %430 = vst [vmem:[#allocation1 + $0x10] ss:$2 sm:$0xff] %v1940_v4 }
  0x33   :  { %v1975_v28 = vld.sshfl [vmem:[#allocation1 + $0x20] sm:$0xff pattern:$0x75316420]  ;;  %v1977_v29 = vld.sshfl [vmem:[#allocation1 + $0x28] sm:$0xff pattern:$0x75316420] }
  0x34   :  { %453 = vst [vmem:[#allocation1 + $0x21] ss:$2 sm:$0xff] %v421_v25  ;;  %247 = vrot.lane.b32.xlu2 %v241_v23, %s1880_s1 }
  0x37   :  { %v1980_v30 = vld.sshfl [vmem:[#allocation1] sm:$0xff pattern:$0x75316420]  ;;  %v1982_v31 = vld.sshfl [vmem:[#allocation1 + $0x8] sm:$0xff pattern:$0x75316420] }
  0x38   :  { %449 = vst [vmem:[#allocation1 + $0x1] ss:$2 sm:$0xff] %v1931_v1 }
  0x39   :  { %v1985_v32 = vld.sshfl [vmem:[#allocation1 + $0x10] sm:$0xff pattern:$0x75316420]  ;;  %v1987_v33 = vld.sshfl [vmem:[#allocation1 + $0x18] sm:$0xff pattern:$0x75316420] }
  0x3a   :  { %253 = vrot.lane.b32.xlu0 %v244_v27, %s1880_s1  ;;  %451 = vst [vmem:[#allocation1 + $0x11] ss:$2 sm:$0xff] %v1962_v14  ;;  %257 = vrot.lane.b32.xlu1 %v246_v22, %s1880_s1 }
  0x3b   :  { %v458_v34 = vld.sshfl [vmem:[#allocation1 + $0x20] sm:$0xff pattern:$0x75316420] }
  0x3c   :  { %486 = vst [vmem:[#allocation1 + $0x20] ss:$2 sm:$0xff] %v1958_v11 }
  0x3f   :  { %v454_v35 = vld.sshfl [vmem:[#allocation1] sm:$0xff pattern:$0x75316420]  ;;  %v455_v36 = vld.sshfl [vmem:[#allocation1 + $0x8] sm:$0xff pattern:$0x75316420] }
  0x40   :  { %482 = vst [vmem:[#allocation1] ss:$2 sm:$0xff] %v1931_v1 }
  0x41   :  { %v457_v37 = vld.sshfl [vmem:[#allocation1 + $0x18] sm:$0xff pattern:$0x75316420]  ;;  %v456_v38 = vld.sshfl [vmem:[#allocation1 + $0x10] sm:$0xff pattern:$0x75316420] }
  0x42   :  { %249 = vrot.lane.b32.xlu0 %v242_v24, %s1880_s1  ;;  %v1548_v39 = vpack.i.bf16 %v458_v34, %v457_v37  ;;  %v1543_v40 = vpack.i.bf16 %v456_v38, %v208_v13  ;;  %484 = vst [vmem:[#allocation1 + $0x10] ss:$2 sm:$0xff] %v1962_v14 }
  0x43   :  { %v492_v41 = vld.sshfl [vmem:[#allocation1 + $0x28] sm:$0xff pattern:$0x75316420]  ;;  %v491_v42 = vld.sshfl [vmem:[#allocation1 + $0x20] sm:$0xff pattern:$0x75316420] }
  0x44   :  { %1549 = vrot.lane.b32.xlu1 %v1548_v39, %s1879_s0  ;;  %1544 = vrot.lane.b32.xlu2 %v1543_v40, %s1879_s0  ;;  %669 = vst [vmem:[#allocation1 + $0x20] ss:$2 sm:$0xff] %v1933_v2 }
  0x47   :  { %v488_v43 = vld.sshfl [vmem:[#allocation1 + $0x8] sm:$0xff pattern:$0x75316420]  ;;  %v487_v44 = vld.sshfl [vmem:[#allocation1] sm:$0xff pattern:$0x75316420] }
  0x48   :  { %665 = vst [vmem:[#allocation1] ss:$2 sm:$0xff] %v1938_v3 }
  0x49   :  { %v489_v45 = vld.sshfl [vmem:[#allocation1 + $0x10] sm:$0xff pattern:$0x75316420]  ;;  %v490_v46 = vld.sshfl [vmem:[#allocation1 + $0x18] sm:$0xff pattern:$0x75316420] }
  0x4a   :  { %497 = vrot.lane.b32.xlu0 %v489_v45, %s1880_s1  ;;  %667 = vst [vmem:[#allocation1 + $0x10] ss:$2 sm:$0xff] %v1940_v4 }
  0x4b   :  { %v2002_v47 = vld.sshfl [vmem:[#allocation1 + $0x20] sm:$0xff pattern:$0x75316420]  ;;  %v2004_v48 = vld.sshfl [vmem:[#allocation1 + $0x28] sm:$0xff pattern:$0x75316420] }
  0x4c   :  { %499 = vrot.lane.b32.xlu1 %v490_v46, %s1880_s1  ;;  %501 = vrot.lane.b32.xlu2 %v491_v42, %s1880_s1  ;;  %690 = vst [vmem:[#allocation1 + $0x21] ss:$2 sm:$0xff] %v1958_v11 }
  0x4f   :  { %v2009_v49 = vld.sshfl [vmem:[#allocation1] sm:$0xff pattern:$0x75316420]  ;;  %v2011_v50 = vld.sshfl [vmem:[#allocation1 + $0x8] sm:$0xff pattern:$0x75316420] }
  0x50   :  { %686 = vst [vmem:[#allocation1 + $0x1] ss:$2 sm:$0xff] %v1931_v1 }
  0x51   :  { %v2014_v51 = vld.sshfl [vmem:[#allocation1 + $0x10] sm:$0xff pattern:$0x75316420]  ;;  %v2016_v52 = vld.sshfl [vmem:[#allocation1 + $0x18] sm:$0xff pattern:$0x75316420] }
  0x52   :  { %503 = vrot.lane.b32.xlu0 %v492_v41, %s1880_s1  ;;  %688 = vst [vmem:[#allocation1 + $0x11] ss:$2 sm:$0xff] %v1962_v14 }
  0x53   :  { %v695_v53 = vld.sshfl [vmem:[#allocation1 + $0x20] sm:$0xff pattern:$0x75316420]  ;;  %v696_v54 = vld.sshfl [vmem:[#allocation1 + $0x28] sm:$0xff pattern:$0x75316420] }
  0x54   :  { %495 = vrot.lane.b32.xlu1 %v488_v43, %s1880_s1  ;;  %724 = vst [vmem:[#allocation1 + $0x20] ss:$2 sm:$0xff] %v1958_v11  ;;  %v1563_v61 = vpack.i.bf16 %v454_v35, %v696_v54 }
  0x57   :  { %v692_v55 = vld.sshfl [vmem:[#allocation1 + $0x8] sm:$0xff pattern:$0x75316420]  ;;  %v691_v56 = vld.sshfl [vmem:[#allocation1] sm:$0xff pattern:$0x75316420] }
  0x58   :  { %720 = vst [vmem:[#allocation1] ss:$2 sm:$0xff] %v1931_v1  ;;  %v1568_v2 = vpack.i.bf16 %v691_v56, %v455_v36 }
  0x59   :  { %v693_v57 = vld.sshfl [vmem:[#allocation1 + $0x10] sm:$0xff pattern:$0x75316420]  ;;  %v694_v58 = vld.sshfl [vmem:[#allocation1 + $0x18] sm:$0xff pattern:$0x75316420] }
  0x5a   :  { %v1553_v59 = vpack.i.bf16 %v693_v57, %v1965_v18  ;;  %v1558_v60 = vpack.i.bf16 %v695_v53, %v694_v58  ;;  %722 = vst [vmem:[#allocation1 + $0x10] ss:$2 sm:$0xff] %v1962_v14  ;;  %493 = vrot.lane.b32.xlu0 %v487_v44, %s1880_s1 }
  0x5b   :  { %v730_v1 = vld.sshfl [vmem:[#allocation1 + $0x28] sm:$0xff pattern:$0x75316420]  ;;  %v729_v11 = vld.sshfl [vmem:[#allocation1 + $0x20] sm:$0xff pattern:$0x75316420] }
  0x5c   :  { %1554 = vrot.lane.b32.xlu2 %v1553_v59, %s1879_s0  ;;  %1559 = vrot.lane.b32.xlu1 %v1558_v60, %s1879_s0 }
  0x5f   :  { %v726_v3 = vld.sshfl [vmem:[#allocation1 + $0x8] sm:$0xff pattern:$0x75316420]  ;;  %v725_v4 = vld.sshfl [vmem:[#allocation1] sm:$0xff pattern:$0x75316420] }
  0x61   :  { %v728_v62 = vld.sshfl [vmem:[#allocation1 + $0x18] sm:$0xff pattern:$0x75316420]  ;;  %v727_v63 = vld.sshfl [vmem:[#allocation1 + $0x10] sm:$0xff pattern:$0x75316420] }
  0x62   :  { %735 = vrot.lane.b32.xlu0 %v727_v63, %s1880_s1 }
  0x64   :  { %1564 = vrot.lane.b32.xlu2 %v1563_v61, %s1879_s0  ;;  %737 = vrot.lane.b32.xlu1 %v728_v62, %s1880_s1 }
  0x6a   :  { %741 = vrot.lane.b32.xlu0 %v730_v1, %s1880_s1 }
  0x6c   :  { %1569 = vrot.lane.b32.xlu2 %v1568_v2, %s1879_s0  ;;  %733 = vrot.lane.b32.xlu1 %v726_v3, %s1880_s1 }
  0x72   :  { %731 = vrot.lane.b32.xlu0 %v725_v4, %s1880_s1 }
  0x74   :  { %699 = vrot.lane.b32.xlu2 %v692_v55, %s1879_s0 }
  0x7c   :  { %739 = vrot.lane.b32.xlu2 %v729_v11, %s1880_s1 }
  0x86   :  { %v1535_v12 = vpop.permute.xlu2 %1534 }
  0x87   :  { %v1537_v14 = vunpack.i.h.bf16 %v1535_v12  ;;  %v1536_v15 = vunpack.i.l.bf16 %v1535_v12 }
  0x89   :  { %v225_v20 = vsel %vm221_vm0, %v1536_v15, %v1537_v14 }
  0x8a   :  { %v269_v27 = vsel %vm265_vm1, %v1956_v10, %v225_v20 }
  0x8e   :  { %v2037_v13 = vpop.permute.xlu2 %247 }
  0x9c   :  { %v1540_v16 = vpop.permute.xlu1 %1539 }
  0x9d   :  { %v1542_v17 = vunpack.i.h.bf16 %v1540_v16  ;;  %v1541_v18 = vunpack.i.l.bf16 %v1540_v16 }
  0x9e   :  { %v2039_v19 = vpop.permute.xlu2 %1544 }
  0x9f   :  { %v222_v21 = vsel %vm221_vm0, %v1541_v18, %v1542_v17  ;;  %v1546_v22 = vunpack.i.l.bf16 %v2039_v19  ;;  %v1547_v44 = vunpack.i.h.bf16 %v2039_v19 }
  0xa0   :  { %v266_v23 = vsel %vm265_vm1, %v1949_v7, %v222_v21 }
  0xa1   :  { %v226_v24 = vsel %vm221_vm0, %v1537_v14, %v1546_v22  ;;  %v271_v25 = vsel %vm265_vm1, %v1946_v6, %v1546_v22 }
  0xa2   :  { %v1578_v26 = vpack.i.bf16 %v266_v23, %v271_v25  ;;  %v270_v34 = vsel %vm265_vm1, %v1944_v5, %v226_v24 }
  0xa3   :  { %v1573_v35 = vpack.i.bf16 %v270_v34, %v269_v27 }
  0xa4   :  { %v252_v36 = vpop.permute.xlu0 %251  ;;  %1579 = vrot.lane.b32.xlu1 %v1578_v26, %s1881_s30  ;;  %v256_v37 = vpop.permute.xlu1 %255 }
  0xa5   :  { %1574 = vrot.lane.b32.xlu0 %v1573_v35, %s1881_s30 }
  0xa6   :  { %v2055_v7 = vpop.permute.xlu2 %501 }
  0xac   :  { %v254_v38 = vpop.permute.xlu0 %253  ;;  %v258_v6 = vpop.permute.xlu1 %257 }
  0xad   :  { %v262_v39 = vsel %vm259_vm2, %v252_v36, %v254_v38  ;;  %v264_v10 = vsel %vm259_vm2, %v256_v37, %v258_v6 }
  0xae   :  { %297 = vrot.lane.b32.xlu0 %v262_v39, %s1881_s30  ;;  %301 = vrot.lane.b32.xlu2 %v264_v10, %s1881_s30 }
  0xb4   :  { %v250_v5 = vpop.permute.xlu0 %249 }
  0xb5   :  { %v261_v40 = vsel %vm259_vm2, %v250_v5, %v252_v36  ;;  %v260_v41 = vsel %vm259_vm2, %v2037_v13, %v250_v5 }
  0xb6   :  { %v1550_v42 = vpop.permute.xlu1 %1549  ;;  %v2064_v43 = vpop.permute.xlu2 %1554  ;;  %295 = vrot.lane.b32.xlu0 %v261_v40, %s1881_s30  ;;  %293 = vrot.lane.b32.xlu2 %v260_v41, %s1881_s30 }
  0xb7   :  { %v1552_v45 = vunpack.i.h.bf16 %v1550_v42  ;;  %v1551_v46 = vunpack.i.l.bf16 %v1550_v42  ;;  %v1556_v53 = vunpack.i.l.bf16 %v2064_v43 }
  0xb9   :  { %v471_v54 = vsel %vm221_vm0, %v1547_v44, %v1551_v46  ;;  %v472_v55 = vsel %vm221_vm0, %v1551_v46, %v1552_v45  ;;  %v223_v56 = vsel %vm221_vm0, %v1542_v17, %v1556_v53  ;;  %v224_v57 = vsel %vm221_vm0, %v1556_v53, %v1536_v15 }
  0xba   :  { %v267_v58 = vsel %vm265_vm1, %v1951_v8, %v223_v56  ;;  %v268_v59 = vsel %vm265_vm1, %v1954_v9, %v224_v57  ;;  %v513_v60 = vsel %vm265_vm1, %v1987_v33, %v471_v54  ;;  %v514_v61 = vsel %vm265_vm1, %v1975_v28, %v472_v55 }
  0xbb   :  { %v1583_v62 = vpack.i.bf16 %v268_v59, %v267_v58  ;;  %v1593_v1 = vpack.i.bf16 %v514_v61, %v513_v60  ;;  %v515_v9 = vsel %vm265_vm1, %v1977_v29, %v1552_v45  ;;  %v263_v29 = vsel %vm259_vm2, %v254_v38, %v256_v37 }
  0xbc   :  { %v498_v63 = vpop.permute.xlu0 %497 }
  0xbd   :  { %1584 = vrot.lane.b32.xlu1 %v1583_v62, %s1881_s30 }
  0xbe   :  { %v500_v2 = vpop.permute.xlu1 %499  ;;  %v1565_v3 = vpop.permute.xlu2 %1564  ;;  %1594 = vrot.lane.b32.xlu2 %v1593_v1, %s1882_s6 }
  0xbf   :  { %v1567_v8 = vunpack.i.h.bf16 %v1565_v3  ;;  %v507_v28 = vsel %vm259_vm2, %v498_v63, %v500_v2  ;;  %v508_v14 = vsel %vm259_vm2, %v500_v2, %v2055_v7  ;;  %v1566_v34 = vunpack.i.l.bf16 %v1565_v3 }
  0xc1   :  { %v510_v33 = vsel %vm265_vm1, %v1980_v30, %v1567_v8 }
  0xc2   :  { %v1588_v4 = vpack.i.bf16 %v510_v33, %v515_v9  ;;  %v272_v9 = vld [vmem:[#allocation7] sm:$0xff] }
  0xc4   :  { %v504_v11 = vpop.permute.xlu0 %503  ;;  %1589 = vrot.lane.b32.xlu0 %v1588_v4, %s1882_s6 }
  0xc5   :  { %291 = vrot.lane.b32.xlu1 %v2037_v13, %s1881_s30  ;;  %v1557_v13 = vunpack.i.h.bf16 %v2064_v43 }
  0xc6   :  { %v496_v12 = vpop.permute.xlu1 %495  ;;  %542 = vrot.lane.b32.xlu2 %v507_v28, %s1882_s6  ;;  %v1570_v15 = vpop.permute.xlu2 %1569 }
  0xc7   :  { %v506_v25 = vsel %vm259_vm2, %v496_v12, %v498_v63  ;;  %v1571_v10 = vunpack.i.l.bf16 %v1570_v15  ;;  %v1572_v40 = vunpack.i.h.bf16 %v1570_v15 }
  0xc9   :  { %v469_v42 = vsel %vm221_vm0, %v1567_v8, %v1571_v10 }
  0xca   :  { %v511_v46 = vsel %vm265_vm1, %v1982_v31, %v469_v42 }
  0xcc   :  { %544 = vrot.lane.b32.xlu0 %v508_v14, %s1882_s6  ;;  %v494_v30 = vpop.permute.xlu0 %493 }
  0xcd   :  { %299 = vrot.lane.b32.xlu1 %v263_v29, %s1881_s30  ;;  %v505_v16 = vsel %vm259_vm2, %v494_v30, %v496_v12 }
  0xce   :  { %v1560_v17 = vpop.permute.xlu1 %1559  ;;  %538 = vrot.lane.b32.xlu2 %v505_v16, %s1882_s6  ;;  %v700_v35 = vpop.permute.xlu2 %699 }
  0xcf   :  { %v1562_v18 = vunpack.i.h.bf16 %v1560_v17  ;;  %v1561_v20 = vunpack.i.l.bf16 %v1560_v17  ;;  %v709_v43 = vsel %vm221_vm0, %v1572_v40, %v700_v35  ;;  %v710_v31 = vsel %vm221_vm0, %v700_v35, %v1557_v13 }
  0xd0   :  { %v749_v54 = vsel %vm265_vm1, %v2011_v50, %v709_v43 }
  0xd1   :  { %v711_v21 = vsel %vm221_vm0, %v1557_v13, %v1561_v20  ;;  %v712_v22 = vsel %vm221_vm0, %v1561_v20, %v1562_v18  ;;  %v713_v36 = vsel %vm221_vm0, %v1562_v18, %v1566_v34 }
  0xd2   :  { %v751_v23 = vsel %vm265_vm1, %v2016_v52, %v711_v21  ;;  %v752_v24 = vsel %vm265_vm1, %v2002_v47, %v712_v22  ;;  %v753_v52 = vsel %vm265_vm1, %v2004_v48, %v713_v36  ;;  %v509_v47 = vsel %vm259_vm2, %v2055_v7, %v504_v11 }
  0xd3   :  { %v1598_v27 = vpack.i.bf16 %v752_v24, %v751_v23  ;;  %v470_v7 = vsel %vm221_vm0, %v1571_v10, %v1547_v44  ;;  %v748_v44 = vsel %vm265_vm1, %v2009_v49, %v1572_v40 }
  0xd4   :  { %540 = vrot.lane.b32.xlu0 %v506_v25, %s1882_s6  ;;  %v736_v26 = vpop.permute.xlu0 %735  ;;  %v512_v53 = vsel %vm265_vm1, %v1985_v32, %v470_v7  ;;  %v1608_v56 = vpack.i.bf16 %v749_v54, %v748_v44  ;;  %v750_v32 = vsel %vm265_vm1, %v2014_v51, %v710_v31 }
  0xd5   :  { %536 = vrot.lane.b32.xlu1 %v494_v30, %s1882_s6  ;;  %v1603_v55 = vpack.i.bf16 %v512_v53, %v511_v46  ;;  %v755_v53 = vld [vmem:[#allocation7 + $0x10] sm:$0xff] }
  0xd6   :  { %1599 = vrot.lane.b32.xlu2 %v1598_v27, %s1883_s7  ;;  %v738_v37 = vpop.permute.xlu1 %737  ;;  %v740_v39 = vpop.permute.xlu2 %739 }
  0xd7   :  { %v745_v6 = vsel %vm259_vm2, %v736_v26, %v738_v37  ;;  %v746_v5 = vsel %vm259_vm2, %v738_v37, %v740_v39  ;;  %v165_v37 = vld [vmem:[%s2436_s2] sm:$0xff] }
  0xdc   :  { %772 = vrot.lane.b32.xlu0 %v753_v52, %s1883_s7  ;;  %v742_v38 = vpop.permute.xlu0 %741  ;;  %v1884_v52 = vmov 0  }
  0xdd   :  { %546 = vrot.lane.b32.xlu1 %v509_v47, %s1882_s6  ;;  %v747_v48 = vsel %vm259_vm2, %v740_v39, %v742_v38  ;;  %v517_v47 = vld [vmem:[#allocation7 + $0x8] sm:$0xff]  ;;  %1794 = vset.pattern.permute.xlu2 %v1884_v52 }
  0xde   :  { %780 = vrot.lane.b32.xlu2 %v745_v6, %s1883_s7  ;;  %v734_v45 = vpop.permute.xlu1 %733  ;;  %1613 = vset.pattern.permute.xlu1 %v1884_v52 }
  0xdf   :  { %v744_v50 = vsel %vm259_vm2, %v734_v45, %v736_v26  ;;  %1795 = vset.pattern.permute.xlu0 %v1884_v52 }
  0xe4   :  { %782 = vrot.lane.b32.xlu0 %v746_v5, %s1883_s7  ;;  %v732_v41 = vpop.permute.xlu0 %731 }
  0xe5   :  { %784 = vrot.lane.b32.xlu1 %v747_v48, %s1883_s7  ;;  %v743_v19 = vsel %vm259_vm2, %v732_v41, %v734_v45 }
  0xe6   :  { %774 = vrot.lane.b32.xlu2 %v732_v41, %s1883_s7 }
  0xec   :  { %776 = vrot.lane.b32.xlu0 %v743_v19, %s1883_s7 }
  0xed   :  { %1604 = vrot.lane.b32.xlu1 %v1603_v55, %s1882_s6 }
  0xee   :  { %1609 = vrot.lane.b32.xlu2 %v1608_v56, %s1883_s7 }
  0xf4   :  { %766 = vrot.lane.b32.xlu0 %v750_v32, %s1883_s7 }
  0xf5   :  { %778 = vrot.lane.b32.xlu1 %v744_v50, %s1883_s7 }
  0xfc   :  { %1615 = vrot.lane.b32.xlu0 %v1878_v0, %s1880_s1 }
  0xfd   :  { %168 = vperm.xlu1 %1613, %v165_v37  }
 0x104   :  { %1620 = vrot.lane.b32.xlu0 %v1878_v0, %s1879_s0 }
 0x108   :  { %v302_v49 = vpop.permute.xlu2 %301 }
 0x110   :  { %v294_v58 = vpop.permute.xlu2 %293 }
 0x116   :  { %v1580_v61 = vpop.permute.xlu1 %1579 }
 0x117   :  { %v1575_v57 = vpop.permute.xlu0 %1574  ;;  %v1582_v28 = vunpack.i.h.bf16 %v1580_v61  ;;  %v1581_v15 = vunpack.i.l.bf16 %v1580_v61 }
 0x118   :  { %v2150_v60 = vpop.permute.xlu2 %1594  ;;  %v1577_v29 = vunpack.i.h.bf16 %v1575_v57  ;;  %v1576_v30 = vunpack.i.l.bf16 %v1575_v57 }
 0x119   :  { %v1597_v20 = vunpack.i.h.bf16 %v2150_v60  ;;  %v1596_v21 = vunpack.i.l.bf16 %v2150_v60 }
 0x11a   :  { %v306_v23 = vsel %vm303_vm3, %v1576_v30, %v1577_v29  ;;  %v307_v24 = vsel %vm303_vm3, %v1577_v29, %v1581_v15 }
 0x11b   :  { %v551_v26 = vsel %vm548_vm5, %v1596_v21, %v1597_v20 }
 0x120   :  { %v298_v59 = vpop.permute.xlu0 %297  ;;  %v543_v51 = vpop.permute.xlu2 %542 }
 0x128   :  { %v296_v62 = vpop.permute.xlu0 %295  ;;  %v539_v4 = vpop.permute.xlu2 %538 }
 0x129   :  { %v309_v63 = vsel %vm303_vm3, %v294_v58, %v296_v62 }
 0x12a   :  { %1485 = vmatpush.msk.msra.mxu1 %vm265_vm1, %v309_v63 }
 0x12f   :  { %v1585_v1 = vpop.permute.xlu1 %1584 }
 0x130   :  { %v1587_v2 = vunpack.i.h.bf16 %v1585_v1  ;;  %v1586_v3 = vunpack.i.l.bf16 %v1585_v1  ;;  %v1600_v22 = vpop.permute.xlu2 %1599 }
 0x131   :  { %v1602_v48 = vunpack.i.h.bf16 %v1600_v22  ;;  %v1601_v41 = vunpack.i.l.bf16 %v1600_v22 }
 0x132   :  { %v305_v8 = vsel %vm303_vm3, %v1586_v3, %v1587_v2  ;;  %v304_v14 = vsel %vm303_vm3, %v1582_v28, %v1586_v3  ;;  %v59_v2 = vlaneseq }
 0x133   :  { %363 = vmatpush.msra.mxu1 %v305_v8  ;;  %v789_v54 = vsel %vm786_vm6, %v1601_v41, %v1602_v48 }
 0x134   :  { %1486 = vmatmul.msk.f32.vlgmr.msra.gmra.mxu1 %vm316_vm4, %v272_v9  ;;  %v60_v3 = vand.u32 127, %v59_v2 }
 0x136   :  { %v2155_v33 = vpop.permute.xlu0 %1589  ;;  %v61_v8 = vadd.s32 128, %v60_v3 }
 0x137   :  { %v292_v11 = vpop.permute.xlu1 %291  ;;  %v1591_v6 = vunpack.i.l.bf16 %v2155_v33  ;;  %v1592_v31 = vunpack.i.h.bf16 %v2155_v33  ;;  %v63_v33 = vadd.s32 512, %v60_v3 }
 0x138   :  { %v308_v12 = vsel %vm303_vm3, %v292_v11, %v294_v58  ;;  %v781_v38 = vpop.permute.xlu2 %780  ;;  %v75_v11 = vand.u32 15, %v61_v8 }
 0x139   :  { %1483 = vmatpush.msk.msra.mxu0 %vm265_vm1, %v308_v12  ;;  %v552_v40 = vsel %vm548_vm5, %v1597_v20, %v1591_v6  ;;  %v89_v30 = vand.u32 15, %v63_v33 }
 0x13b   :  { %343 = vmatpush.msra.mxu0 %v304_v14  ;;  %v139_v52 = vadd.s32 1, %v89_v30 }
 0x13c   :  { %1484 = vmatmul.msk.f32.vlgmr.msra.gmra.mxu0 %vm316_vm4, %v272_v9 }
 0x13d   :  { %vm147_vm14 = vcmp.lt.s32.totalorder %v139_v52, 16 }
 0x13e   :  { %v545_v16 = vpop.permute.xlu0 %544 }
 0x13f   :  { %v300_v17 = vpop.permute.xlu1 %299  ;;  %v555_v25 = vsel %vm548_vm5, %v543_v51, %v545_v16 }
 0x140   :  { %v310_v13 = vsel %vm303_vm3, %v298_v59, %v300_v17  ;;  %v311_v18 = vsel %vm303_vm3, %v300_v17, %v302_v49  ;;  %v775_v42 = vpop.permute.xlu2 %774  ;;  %v113_v17 = vadd.s32 4294967295, %v75_v11 }
 0x141   :  { %1487 = vmatpush.msk.msra.mxu2 %vm265_vm1, %v310_v13  ;;  %1489 = vmatpush.msk.msra.mxu3 %vm265_vm1, %v311_v18  ;;  %v115_v18 = vadd.s32 4294967295, %v89_v30 }
 0x142   :  { %vm117_vm8 = vcmp.ge.s32.totalorder %v113_v17, 0 }
 0x143   :  { %383 = vmatpush.msra.mxu2 %v306_v23  ;;  %403 = vmatpush.msra.mxu3 %v307_v24  ;;  %vm119_vm10 = vcmp.ge.s32.totalorder %v115_v18, 0  ;;  %v137_v23 = vadd.s32 1, %v75_v11 }
 0x144   :  { %1490 = vmatmul.msk.f32.vlgmr.msra.gmra.mxu3 %vm316_vm4, %v272_v9  ;;  %1488 = vmatmul.msk.f32.vlgmr.msra.gmra.mxu2 %vm316_vm4, %v272_v9  ;;  %v62_v9 = vadd.s32 384, %v60_v3 }
 0x145   :  { %1495 = vmatpush.msk.msrb.mxu2 %vm265_vm1, %v555_v25  ;;  %v2217_v25 = vsel %vm117_vm8, 1.0, %v1878_v0  ;;  %vm145_vm12 = vcmp.lt.s32.totalorder %v137_v23, 16 }
 0x146   :  { %v541_v27 = vpop.permute.xlu0 %540  ;;  %v82_v29 = vand.u32 15, %v62_v9 }
 0x147   :  { %627 = vmatpush.msrb.mxu2 %v551_v26  ;;  %v537_v34 = vpop.permute.xlu1 %536  ;;  %v554_v35 = vsel %vm548_vm5, %v539_v4, %v541_v27 }
 0x148   :  { %1493 = vmatpush.msk.msrb.mxu1 %vm265_vm1, %v554_v35  ;;  %v553_v36 = vsel %vm548_vm5, %v537_v34, %v539_v4  ;;  %v1610_v55 = vpop.permute.xlu2 %1609  ;;  %v68_v4 = vand.u32 15, %v60_v3  ;;  %v114_v13 = vadd.s32 4294967295, %v82_v29  ;;  %v2223_v35 = vsel %vm119_vm10, 1.0, %v1878_v0 }
 0x149   :  { %1491 = vmatpush.msk.msrb.mxu0 %vm265_vm1, %v553_v36  ;;  %v1612_v49 = vunpack.i.h.bf16 %v1610_v55  ;;  %v1611_v57 = vunpack.i.l.bf16 %v1610_v55  ;;  %v138_v36 = vadd.s32 1, %v82_v29 }
 0x14a   :  { %vm118_vm9 = vcmp.ge.s32.totalorder %v114_v13, 0  ;;  %v136_v22 = vadd.s32 1, %v68_v4 }
 0x14b   :  { %v787_v61 = vsel %vm786_vm6, %v1611_v57, %v1612_v49  ;;  %v2220_v34 = vsel %vm118_vm9, 1.0, %v1878_v0  ;;  %vm146_vm13 = vcmp.lt.s32.totalorder %v138_v36, 16 }
 0x14c   :  { %1496 = vmatmul.msk.f32.vlgmr.msrb.gmra.mxu2 %vm316_vm4, %v517_v47  ;;  %vm144_vm11 = vcmp.lt.s32.totalorder %v136_v22, 16 }
 0x14e   :  { %v773_v39 = vpop.permute.xlu0 %772 }
 0x14f   :  { %v547_v10 = vpop.permute.xlu1 %546  ;;  %v790_v19 = vsel %vm786_vm6, %v1602_v48, %v773_v39 }
 0x150   :  { %v556_v5 = vsel %vm548_vm5, %v545_v16, %v547_v10  ;;  %v112_v16 = vadd.s32 4294967295, %v68_v4  ;;  %v2230_v10 = vsel %vm144_vm11, 1.0, %v1878_v0 }
 0x151   :  { %1497 = vmatpush.msk.msrb.mxu3 %vm265_vm1, %v556_v5  ;;  %v2233_v5 = vsel %vm145_vm12, 1.0, %v1878_v0 }
 0x152   :  { %vm116_vm7 = vcmp.ge.s32.totalorder %v112_v16, 0 }
 0x153   :  { %647 = vmatpush.msrb.mxu3 %v552_v40  ;;  %v2214_v24 = vsel %vm116_vm7, 1.0, %v1878_v0 }
 0x154   :  { %1498 = vmatmul.msk.f32.vlgmr.msrb.gmra.mxu3 %vm316_vm4, %v517_v47 }
 0x156   :  { %v783_v7 = vpop.permute.xlu0 %782 }
 0x157   :  { %v793_v43 = vsel %vm786_vm6, %v781_v38, %v783_v7  ;;  %v785_v45 = vpop.permute.xlu1 %784 }
 0x158   :  { %v794_v46 = vsel %vm786_vm6, %v783_v7, %v785_v45  ;;  %1503 = vmatpush.msk.msra.mxu2 %vm265_vm1, %v793_v43  ;;  %v2236_v45 = vsel %vm146_vm13, 1.0, %v1878_v0 }
 0x159   :  { %1505 = vmatpush.msk.msra.mxu3 %vm265_vm1, %v794_v46  ;;  %v2239_v46 = vsel %vm147_vm14, 1.0, %v1878_v0 }
 0x15a   :  { %865 = vmatpush.msra.mxu2 %v789_v54 }
 0x15b   :  { %885 = vmatpush.msra.mxu3 %v790_v19  ;;  %1504 = vmatmul.msk.f32.vlgmr.msra.gmra.mxu2 %vm316_vm4, %v755_v53 }
 0x15c   :  { %1506 = vmatmul.msk.f32.vlgmr.msra.gmra.mxu3 %vm316_vm4, %v755_v53 }
 0x15e   :  { %v777_v44 = vpop.permute.xlu0 %776 }
 0x15f   :  { %v1605_v56 = vpop.permute.xlu1 %1604  ;;  %v791_v60 = vsel %vm786_vm6, %v775_v42, %v777_v44 }
 0x160   :  { %v1607_v32 = vunpack.i.h.bf16 %v1605_v56  ;;  %v1606_v50 = vunpack.i.l.bf16 %v1605_v56 }
 0x162   :  { %v549_v58 = vsel %vm548_vm5, %v1592_v31, %v1606_v50  ;;  %v550_v59 = vsel %vm548_vm5, %v1606_v50, %v1607_v32 }
 0x163   :  { %587 = vmatpush.msrb.mxu0 %v549_v58  ;;  %607 = vmatpush.msrb.mxu1 %v550_v59 }
 0x164   :  { %1492 = vmatmul.msk.f32.vlgmr.msrb.gmra.mxu0 %vm316_vm4, %v517_v47  ;;  %1494 = vmatmul.msk.f32.vlgmr.msrb.gmra.mxu1 %vm316_vm4, %v517_v47 }
 0x165   :  { %1499 = vmatpush.msk.msra.mxu0 %vm265_vm1, %v791_v60 }
 0x166   :  { %v767_v62 = vpop.permute.xlu0 %766 }
 0x167   :  { %825 = vmatpush.msra.mxu0 %v787_v61  ;;  %v779_v63 = vpop.permute.xlu1 %778  ;;  %v788_v1 = vsel %vm786_vm6, %v1612_v49, %v767_v62 }
 0x168   :  { %v792_v51 = vsel %vm786_vm6, %v777_v44, %v779_v63 }
 0x169   :  { %1501 = vmatpush.msk.msra.mxu1 %vm265_vm1, %v792_v51 }
 0x16b   :  { %845 = vmatpush.msra.mxu1 %v788_v1 }
 0x16c   :  { %1500 = vmatmul.msk.f32.vlgmr.msra.gmra.mxu0 %vm316_vm4, %v755_v53  ;;  %1502 = vmatmul.msk.f32.vlgmr.msra.gmra.mxu1 %vm316_vm4, %v755_v53 }
 0x16e   :  { %v1616_v11 = vpop.permute.xlu0 %1615 }
 0x16f   :  { %v169_v39 = vpop.permute.xlu1 %168 }
 0x1b1   :  { %v365_v15 = vpop.f32.mrf.mxu1 }
 0x1b2   :  { %v409_v47 = vmul.f32 %v2217_v25, %v365_v15 }
 0x1b4   :  { %v413_v48 = vadd.f32 %v409_v47, %v169_v39 }
 0x1b9   :  { %v345_v14 = vpop.f32.mrf.mxu0 }
 0x1ba   :  { %v408_v37 = vmul.f32 %v2214_v24, %v345_v14 }
 0x1bc   :  { %v412_v40 = vadd.f32 %v408_v37, %v169_v39 }
 0x1c7   :  { %v385_v28 = vpop.f32.mrf.mxu2  ;;  %v405_v12 = vpop.f32.mrf.mxu3 }
 0x1c8   :  { %v410_v38 = vmul.f32 %v2220_v34, %v385_v28  ;;  %v411_v6 = vmul.f32 %v2223_v35, %v405_v12  ;;  %v2268_v28 = vpop.permute.xlu0 %1620  ;;  %v1618_v12 = vunpack.i.h.bf16 %v1616_v11 }
 0x1ca   :  { %v414_v41 = vadd.f32 %v410_v38, %v169_v39  ;;  %v415_v42 = vadd.f32 %v411_v6, %v169_v39 }
 0x1cf   :  { %v629_v20 = vpop.f32.mrf.mxu2 }
 0x1d0   :  { %v654_v50 = vadd.f32 %v629_v20, %v414_v41  ;;  %v1617_v41 = vunpack.i.l.bf16 %v1616_v11 }
 0x1d7   :  { %v649_v21 = vpop.f32.mrf.mxu3 }
 0x1d8   :  { %v655_v49 = vadd.f32 %v649_v21, %v415_v42 }
 0x1de   :  { %v867_v55 = vpop.f32.mrf.mxu2 }
 0x1df   :  { %v887_v56 = vpop.f32.mrf.mxu3  ;;  %v892_v57 = vmul.f32 %v2236_v45, %v867_v55 }
 0x1e0   :  { %v893_v58 = vmul.f32 %v2239_v46, %v887_v56 }
 0x1e1   :  { %v589_v26 = vpop.f32.mrf.mxu0  ;;  %v609_v27 = vpop.f32.mrf.mxu1  ;;  %v2248_v51 = vadd.f32 %v892_v57, %v654_v50 }
 0x1e2   :  { %v652_v53 = vadd.f32 %v589_v26, %v412_v40  ;;  %v653_v54 = vadd.f32 %v609_v27, %v413_v48  ;;  %v897_v1 = vadd.f32 %v893_v58, %v655_v49  ;;  %v1623_v58 = vunpack.i.h.bf16 %v2268_v28 }
 0x1e3   :  { %v900_v2 = vmax.f32 %v2248_v51, 0.0 }
 0x1e4   :  { %v2255_v3 = vmax.f32 %v897_v1, 0.0 }
 0x1e6   :  { %v1649_v8 = vpack.i.bf16 %v2255_v3, %v900_v2 }
 0x1e9   :  { %v827_v7 = vpop.f32.mrf.mxu0  ;;  %v847_v43 = vpop.f32.mrf.mxu1 }
 0x1ea   :  { %v890_v19 = vmul.f32 %v2230_v10, %v827_v7  ;;  %v891_v44 = vmul.f32 %v2233_v5, %v847_v43 }
 0x1ec   :  { %v894_v31 = vadd.f32 %v890_v19, %v652_v53  ;;  %v895_v32 = vadd.f32 %v891_v44, %v653_v54 }
 0x1ee   :  { %v898_v59 = vmax.f32 %v894_v31, 0.0  ;;  %v899_v60 = vmax.f32 %v895_v32, 0.0 }
 0x1f0   :  { %v1634_v61 = vpack.i.bf16 0.0, %v899_v60  ;;  %v2245_v62 = vpack.i.bf16 %v899_v60, %v898_v59  ;;  %v1624_v63 = vpack.i.bf16 %v898_v59, %v1878_v0 }
 0x1f2   :  { %1635 = vrot.lane.b32.xlu1 %v1634_v61, %s1879_s0  ;;  %1630 = vrot.lane.b32.xlu0 %v2245_v62, %s1880_s1 }
 0x1f3   :  { %1625 = vrot.lane.b32.xlu2 %v1624_v63, %s1879_s0  ;;  %v1622_v63 = vunpack.i.l.bf16 %v2268_v28 }
 0x1fa   :  { %1640 = vrot.lane.b32.xlu1 %v2245_v62, %s1879_s0 }
 0x1fb   :  { %1650 = vrot.lane.b32.xlu2 %v1649_v8, %s1880_s1 }
 0x202   :  { %1645 = vrot.lane.b32.xlu1 %v2245_v62, %s1881_s30 }
 0x203   :  { %1665 = vrot.lane.b32.xlu2 %v1649_v8, %s1879_s0 }
 0x20a   :  { %1655 = vrot.lane.b32.xlu1 %v1649_v8, %s1879_s0 }
 0x212   :  { %1660 = vrot.lane.b32.xlu1 %v2245_v62, %s1882_s6 }
 0x24d   :  { %v1626_v9 = vpop.permute.xlu2 %1625 }
 0x24e   :  { %v1628_v33 = vunpack.i.h.bf16 %v1626_v9  ;;  %v1627_v29 = vunpack.i.l.bf16 %v1626_v9 }
 0x250   :  { %v1669_v4 = vpack.i.bf16 0.0, %v1628_v33 }
 0x252   :  { %1670 = vrot.lane.b32.xlu2 %v1669_v4, %s1882_s6 }
 0x255   :  { %v1651_v39 = vpop.permute.xlu2 %1650 }
 0x256   :  { %v1652_v48 = vunpack.i.l.bf16 %v1651_v39  ;;  %v1653_v42 = vunpack.i.h.bf16 %v1651_v39 }
 0x258   :  { %v967_v54 = vsel %vm259_vm2, %v1618_v12, %v1652_v48  ;;  %v968_v19 = vsel %vm259_vm2, %v1652_v48, %v1653_v42  ;;  %v969_v44 = vsel %vm259_vm2, %v1653_v42, %v1617_v41 }
 0x259   :  { %v1729_v31 = vpack.i.bf16 %v900_v2, %v967_v54  ;;  %v1719_v32 = vpack.i.bf16 %v969_v44, %v968_v19 }
 0x25d   :  { %v1666_v57 = vpop.permute.xlu2 %1665 }
 0x25e   :  { %v1667_v59 = vunpack.i.l.bf16 %v1666_v57  ;;  %v1668_v51 = vunpack.i.h.bf16 %v1666_v57 }
 0x260   :  { %v1286_v60 = vsel %vm221_vm0, %v1623_v58, %v1667_v59  ;;  %v1287_v2 = vsel %vm221_vm0, %v1667_v59, %v1668_v51  ;;  %v1288_v8 = vsel %vm221_vm0, %v1668_v51, %v1622_v63 }
 0x261   :  { %v1774_v1 = vpack.i.bf16 %v1286_v60, %v2255_v3 }
 0x264   :  { %v1636_v14 = vpop.permute.xlu1 %1635  ;;  %v1631_v15 = vpop.permute.xlu0 %1630 }
 0x265   :  { %v1637_v30 = vunpack.i.l.bf16 %v1636_v14  ;;  %v1633_v16 = vunpack.i.h.bf16 %v1631_v15  ;;  %v2270_v17 = vunpack.i.l.bf16 %v1631_v15  ;;  %v1638_v27 = vunpack.i.h.bf16 %v1636_v14 }
 0x267   :  { %v965_v13 = vsel %vm259_vm2, %v2270_v17, %v1633_v16  ;;  %v943_v18 = vsel %vm221_vm0, %v1628_v33, %v1637_v30  ;;  %v966_v20 = vsel %vm259_vm2, %v1633_v16, %v1618_v12  ;;  %v944_v21 = vsel %vm221_vm0, %v1637_v30, %v1627_v29 }
 0x268   :  { %v1674_v22 = vpack.i.bf16 %v965_v13, %v1878_v0  ;;  %v1679_v23 = vpack.i.bf16 %v943_v18, %v966_v20  ;;  %v1684_v26 = vpack.i.bf16 %v2270_v17, %v944_v21  ;;  %v942_v52 = vsel %vm221_vm0, %v1638_v27, %v1628_v33 }
 0x269   :  { %v1689_v38 = vpack.i.bf16 0.0, %v942_v52  ;;  %v1764_v33 = vpack.i.bf16 %v1288_v8, %v1287_v2  ;;  %v1511_v2 = vld [vmem:[%s2437_s3 + $0x4] sm:$0xf] }
 0x26a   :  { %1675 = vrot.lane.b32.xlu0 %v1674_v22, %s1881_s30  ;;  %1680 = vrot.lane.b32.xlu1 %v1679_v23, %s1881_s30 }
 0x26b   :  { %1685 = vrot.lane.b32.xlu2 %v1684_v26, %s1881_s30 }
 0x26c   :  { %v1641_v36 = vpop.permute.xlu1 %1640 }
 0x26d   :  { %v1643_v37 = vunpack.i.h.bf16 %v1641_v36  ;;  %v1642_v47 = vunpack.i.l.bf16 %v1641_v36 }
 0x26f   :  { %v1284_v6 = vsel %vm221_vm0, %v1642_v47, %v1643_v37  ;;  %v1789_v61 = vpack.i.bf16 0.0, %v1642_v47  ;;  %v1285_v9 = vsel %vm221_vm0, %v1643_v37, %v1623_v58 }
 0x270   :  { %v1714_v40 = vpack.i.bf16 %v1284_v6, %v966_v20  ;;  %v1779_v4 = vpack.i.bf16 %v2270_v17, %v1285_v9 }
 0x272   :  { %1695 = vrot.lane.b32.xlu0 %v1674_v22, %s1882_s6  ;;  %1700 = vrot.lane.b32.xlu1 %v1679_v23, %s1882_s6 }
 0x273   :  { %1690 = vrot.lane.b32.xlu2 %v1689_v38, %s1881_s30 }
 0x274   :  { %v2286_v0 = vpop.permute.xlu1 %1645 }
 0x275   :  { %v1648_v15 = vunpack.i.h.bf16 %v2286_v0  ;;  %v1647_v21 = vunpack.i.l.bf16 %v2286_v0  ;;  %v2341_v0 = vld [vmem:[%s2437_s3] sm:$0xf] }
 0x277   :  { %v1008_v39 = vsel %vm303_vm3, %v1647_v21, %v1648_v15 }
 0x27a   :  { %1710 = vrot.lane.b32.xlu0 %v1674_v22, %s1883_s7  ;;  %1715 = vrot.lane.b32.xlu1 %v1714_v40, %s1883_s7 }
 0x27b   :  { %1705 = vrot.lane.b32.xlu2 %v1684_v26, %s1882_s6 }
 0x27c   :  { %v1656_v7 = vpop.permute.xlu1 %1655 }
 0x27d   :  { %v1658_v43 = vunpack.i.h.bf16 %v1656_v7  ;;  %v1657_v53 = vunpack.i.l.bf16 %v1656_v7 }
 0x27f   :  { %v946_v55 = vsel %vm221_vm0, %v1657_v53, %v1658_v43  ;;  %v945_v50 = vsel %vm221_vm0, %v1627_v29, %v1657_v53 }
 0x280   :  { %v1724_v56 = vpack.i.bf16 %v1658_v43, %v946_v55  ;;  %v1734_v49 = vpack.i.bf16 %v945_v50, %v2255_v3 }
 0x282   :  { %1725 = vrot.lane.b32.xlu0 %v1724_v56, %s1881_s30  ;;  %1730 = vrot.lane.b32.xlu1 %v1729_v31, %s1881_s30 }
 0x283   :  { %1720 = vrot.lane.b32.xlu2 %v1719_v32, %s1881_s30 }
 0x284   :  { %v1661_v12 = vpop.permute.xlu1 %1660 }
 0x285   :  { %v1663_v54 = vunpack.i.h.bf16 %v1661_v12  ;;  %v1662_v19 = vunpack.i.l.bf16 %v1661_v12 }
 0x287   :  { %v1162_v58 = vsel %vm548_vm5, %v1662_v19, %v1663_v54 }
 0x28a   :  { %1740 = vrot.lane.b32.xlu0 %v1719_v32, %s1882_s6  ;;  %1750 = vrot.lane.b32.xlu1 %v1729_v31, %s1882_s6 }
 0x28b   :  { %1735 = vrot.lane.b32.xlu2 %v1734_v49, %s1881_s30 }
 0x292   :  { %1745 = vrot.lane.b32.xlu0 %v1724_v56, %s1882_s6  ;;  %1770 = vrot.lane.b32.xlu1 %v1729_v31, %s1883_s7 }
 0x293   :  { %1755 = vrot.lane.b32.xlu2 %v1734_v49, %s1882_s6 }
 0x29a   :  { %1760 = vrot.lane.b32.xlu0 %v1719_v32, %s1883_s7  ;;  %1790 = vrot.lane.b32.xlu1 %v1789_v61, %s1883_s7 }
 0x29b   :  { %1775 = vrot.lane.b32.xlu2 %v1774_v1, %s1883_s7 }
 0x2a2   :  { %1765 = vrot.lane.b32.xlu0 %v1764_v33, %s1883_s7 }
 0x2a3   :  { %1780 = vrot.lane.b32.xlu2 %v1779_v4, %s1883_s7 }
 0x2aa   :  { %1785 = vrot.lane.b32.xlu0 %v2245_v62, %s1883_s7 }
 0x2ac   :  { %v1671_v3 = vpop.permute.xlu2 %1670 }
 0x2ad   :  { %v1673_v44 = vunpack.i.h.bf16 %v1671_v3  ;;  %v1672_v55 = vunpack.i.l.bf16 %v1671_v3 }
 0x2af   :  { %v1161_v57 = vsel %vm548_vm5, %v1673_v44, %v1662_v19 }
 0x2c5   :  { %v1686_v11 = vpop.permute.xlu2 %1685 }
 0x2c6   :  { %v1688_v16 = vunpack.i.h.bf16 %v1686_v11  ;;  %v1687_v62 = vunpack.i.l.bf16 %v1686_v11 }
 0x2cd   :  { %v1691_v28 = vpop.permute.xlu2 %1690 }
 0x2ce   :  { %v1693_v26 = vunpack.i.h.bf16 %v1691_v28  ;;  %v1692_v27 = vunpack.i.l.bf16 %v1691_v28 }
 0x2d0   :  { %v1007_v6 = vsel %vm303_vm3, %v1693_v26, %v1647_v21 }
 0x2d5   :  { %v1706_v14 = vpop.permute.xlu2 %1705 }
 0x2d6   :  { %v1708_v41 = vunpack.i.h.bf16 %v1706_v14  ;;  %v1707_v56 = vunpack.i.l.bf16 %v1706_v14 }
 0x2dc   :  { %v2323_v29 = vpop.permute.xlu0 %1675  ;;  %v1681_v30 = vpop.permute.xlu1 %1680 }
 0x2dd   :  { %v1678_v17 = vunpack.i.h.bf16 %v2323_v29  ;;  %v1683_v13 = vunpack.i.h.bf16 %v1681_v30  ;;  %v1682_v18 = vunpack.i.l.bf16 %v1681_v30  ;;  %v2326_v20 = vpop.permute.xlu2 %1720 }
 0x2de   :  { %v1723_v22 = vunpack.i.h.bf16 %v2326_v20  ;;  %v1722_v23 = vunpack.i.l.bf16 %v2326_v20 }
 0x2df   :  { %v1015_v36 = vsel %vm303_vm3, %v1688_v16, %v1678_v17  ;;  %v1016_v52 = vsel %vm303_vm3, %v1678_v17, %v1682_v18  ;;  %v1011_v47 = vsel %vm303_vm3, %v1692_v27, %v1683_v13  ;;  %v1012_v38 = vsel %vm303_vm3, %v1683_v13, %v1687_v62 }
 0x2e0   :  { %1048 = vmatpush.msrb.mxu0 %v1015_v36  ;;  %1068 = vmatpush.msrb.mxu1 %v1016_v52  ;;  %v1018_v37 = vsel %vm303_vm3, %v1722_v23, %v1723_v22  ;;  %v1677_v16 = vunpack.i.l.bf16 %v2323_v29 }
 0x2e1   :  { %1108 = vmatpush.msrb.mxu3 %v1018_v37 }
 0x2e2   :  { %1049 = vmatpush.msrb.mxu0 %v1011_v47  ;;  %1069 = vmatpush.msrb.mxu1 %v1012_v38 }
 0x2e4   :  { %v2345_v40 = vpop.permute.xlu0 %1695  ;;  %v1701_v48 = vpop.permute.xlu1 %1700  ;;  %1050 = vmatpush.msrb.mxu0 %v1007_v6  ;;  %1070 = vmatpush.msrb.mxu1 %v1008_v39 }
 0x2e5   :  { %v1698_v42 = vunpack.i.h.bf16 %v2345_v40  ;;  %v1703_v7 = vunpack.i.h.bf16 %v1701_v48  ;;  %v1702_v43 = vunpack.i.l.bf16 %v1701_v48  ;;  %v1736_v53 = vpop.permute.xlu2 %1735  ;;  %1508 = vmatmul.msk.f32.vlgmr.msrb.gmra.mxu1 %vm1031_vm15, %v2341_v0  ;;  %1507 = vmatmul.msk.f32.vlgmr.msrb.gmra.mxu0 %vm1031_vm15, %v2341_v0 }
 0x2e6   :  { %v1738_v12 = vunpack.i.h.bf16 %v1736_v53  ;;  %v1737_v14 = vunpack.i.l.bf16 %v1736_v53 }
 0x2e7   :  { %v1169_v31 = vsel %vm548_vm5, %v1708_v41, %v1698_v42  ;;  %v1170_v32 = vsel %vm548_vm5, %v1698_v42, %v1702_v43  ;;  %v1165_v50 = vsel %vm548_vm5, %v1672_v55, %v1703_v7  ;;  %v1166_v49 = vsel %vm548_vm5, %v1703_v7, %v1707_v56 }
 0x2e8   :  { %1201 = vmatpush.msra.mxu0 %v1169_v31  ;;  %1221 = vmatpush.msra.mxu1 %v1170_v32  ;;  %v1697_v43 = vunpack.i.l.bf16 %v2345_v40 }
 0x2ea   :  { %1202 = vmatpush.msra.mxu0 %v1165_v50  ;;  %1222 = vmatpush.msra.mxu1 %v1166_v49 }
 0x2ec   :  { %v2358_v59 = vpop.permute.xlu0 %1710  ;;  %v2360_v60 = vpop.permute.xlu1 %1715  ;;  %1203 = vmatpush.msra.mxu0 %v1161_v57  ;;  %1223 = vmatpush.msra.mxu1 %v1162_v58 }
 0x2ed   :  { %v1713_v61 = vunpack.i.h.bf16 %v2358_v59  ;;  %v1717_v63 = vunpack.i.l.bf16 %v2360_v60  ;;  %v1756_v51 = vpop.permute.xlu2 %1755  ;;  %1512 = vmatmul.msk.f32.vlgmr.msra.gmra.mxu0 %vm1031_vm15, %v1511_v2  ;;  %1513 = vmatmul.msk.f32.vlgmr.msra.gmra.mxu1 %vm1031_vm15, %v1511_v2  ;;  %v1718_v29 = vunpack.i.h.bf16 %v2360_v60 }
 0x2ee   :  { %v1758_v48 = vunpack.i.h.bf16 %v1756_v51  ;;  %v1757_v53 = vunpack.i.l.bf16 %v1756_v51 }
 0x2ef   :  { %v1336_v1 = vsel %vm786_vm6, %v1713_v61, %v1717_v63 }
 0x2f0   :  { %1387 = vmatpush.msrb.mxu1 %v1336_v1 }
 0x2f4   :  { %v1726_v8 = vpop.permute.xlu0 %1725  ;;  %v1731_v9 = vpop.permute.xlu1 %1730 }
 0x2f5   :  { %v1728_v33 = vunpack.i.h.bf16 %v1726_v8  ;;  %v1727_v4 = vunpack.i.l.bf16 %v1726_v8  ;;  %v2370_v3 = vpop.permute.xlu2 %1775  ;;  %v1733_v11 = vunpack.i.h.bf16 %v1731_v9  ;;  %v1732_v28 = vunpack.i.l.bf16 %v1731_v9 }
 0x2f6   :  { %v1778_v63 = vunpack.i.h.bf16 %v2370_v3  ;;  %v1712_v8 = vunpack.i.l.bf16 %v2358_v59  ;;  %v1777_v9 = vunpack.i.l.bf16 %v2370_v3 }
 0x2f7   :  { %v1017_v15 = vsel %vm303_vm3, %v1732_v28, %v1722_v23  ;;  %v1014_v30 = vsel %vm303_vm3, %v1727_v4, %v1728_v33  ;;  %v1013_v17 = vsel %vm303_vm3, %v1738_v12, %v1727_v4  ;;  %v1010_v13 = vsel %vm303_vm3, %v1733_v11, %v1737_v14 }
 0x2f8   :  { %1088 = vmatpush.msrb.mxu2 %v1017_v15  ;;  %1109 = vmatpush.msrb.mxu3 %v1014_v30  ;;  %v1009_v18 = vsel %vm303_vm3, %v1677_v16, %v1733_v11  ;;  %v1516_v11 = vld [vmem:[%s2437_s3 + $0x8] sm:$0xf]  ;;  %s1885_s3 = smov [#allocation9]  }
 0x2f9   :  { %s1459_s16 = sshll.u32 %s1885_s3, 4  ;;  %s1460_s16 = int_to_ptr.vmem [resolvable:$true] %s1459_s16 }
 0x2fa   :  { %1089 = vmatpush.msrb.mxu2 %v1013_v17  ;;  %1110 = vmatpush.msrb.mxu3 %v1010_v13 }
 0x2fb   :  { %1510 = vmatmul.msk.f32.vlgmr.msrb.gmra.mxu3 %vm1031_vm15, %v2341_v0 }
 0x2fc   :  { %v1741_v20 = vpop.permute.xlu0 %1740  ;;  %v1751_v21 = vpop.permute.xlu1 %1750  ;;  %1090 = vmatpush.msrb.mxu2 %v1009_v18 }
 0x2fd   :  { %v1743_v62 = vunpack.i.h.bf16 %v1741_v20  ;;  %v1742_v22 = vunpack.i.l.bf16 %v1741_v20  ;;  %v1781_v23 = vpop.permute.xlu2 %1780  ;;  %v1752_v26 = vunpack.i.l.bf16 %v1751_v21  ;;  %1509 = vmatmul.msk.f32.vlgmr.msrb.gmra.mxu2 %vm1031_vm15, %v2341_v0  ;;  %v906_v0 = vld [vmem:[%s2438_s4] sm:$0xf]  ;;  %v1753_v41 = vunpack.i.h.bf16 %v1751_v21 }
 0x2fe   :  { %v1783_v27 = vunpack.i.h.bf16 %v1781_v23  ;;  %v1782_v36 = vunpack.i.l.bf16 %v1781_v23  ;;  %909 = vperm.xlu2 %1794, %v906_v0  }
 0x2ff   :  { %v1171_v52 = vsel %vm548_vm5, %v1752_v26, %v1742_v22  ;;  %v1172_v37 = vsel %vm548_vm5, %v1742_v22, %v1743_v62  ;;  %v1163_v44 = vsel %vm548_vm5, %v1697_v43, %v1753_v41  ;;  %v1164_v55 = vsel %vm548_vm5, %v1753_v41, %v1757_v53 }
 0x300   :  { %1241 = vmatpush.msra.mxu2 %v1171_v52  ;;  %1261 = vmatpush.msra.mxu3 %v1172_v37  ;;  %v1335_v47 = vsel %vm786_vm6, %v1783_v27, %v1713_v61  ;;  %v1332_v38 = vsel %vm786_vm6, %v1718_v29, %v1782_v36 }
 0x301   :  { %1367 = vmatpush.msrb.mxu0 %v1335_v47  ;;  %1388 = vmatpush.msrb.mxu1 %v1332_v38 }
 0x304   :  { %v1746_v6 = vpop.permute.xlu0 %1745  ;;  %v1771_v39 = vpop.permute.xlu1 %1770 }
 0x305   :  { %v1748_v42 = vunpack.i.h.bf16 %v1746_v6  ;;  %v1747_v7 = vunpack.i.l.bf16 %v1746_v6  ;;  %v1772_v40 = vunpack.i.l.bf16 %v1771_v39  ;;  %v1773_v51 = vunpack.i.h.bf16 %v1771_v39 }
 0x307   :  { %v1167_v54 = vsel %vm548_vm5, %v1758_v48, %v1747_v7  ;;  %v1168_v19 = vsel %vm548_vm5, %v1747_v7, %v1748_v42  ;;  %v1329_v28 = vsel %vm786_vm6, %v1712_v8, %v1773_v51  ;;  %v1330_v12 = vsel %vm786_vm6, %v1773_v51, %v1777_v9 }
 0x308   :  { %1242 = vmatpush.msra.mxu2 %v1167_v54  ;;  %1262 = vmatpush.msra.mxu3 %v1168_v19 }
 0x30a   :  { %1243 = vmatpush.msra.mxu2 %v1163_v44  ;;  %1263 = vmatpush.msra.mxu3 %v1164_v55 }
 0x30b   :  { %1514 = vmatmul.msk.f32.vlgmr.msra.gmra.mxu2 %vm1031_vm15, %v1511_v2  ;;  %1515 = vmatmul.msk.f32.vlgmr.msra.gmra.mxu3 %vm1031_vm15, %v1511_v2 }
 0x30c   :  { %v1761_v56 = vpop.permute.xlu0 %1760  ;;  %v1791_v31 = vpop.permute.xlu1 %1790 }
 0x30d   :  { %v1763_v32 = vunpack.i.h.bf16 %v1761_v56  ;;  %v1762_v50 = vunpack.i.l.bf16 %v1761_v56  ;;  %v1792_v49 = vunpack.i.l.bf16 %v1791_v31  ;;  %v1793_v3 = vunpack.i.h.bf16 %v1791_v31 }
 0x30f   :  { %v1331_v57 = vsel %vm786_vm6, %v1792_v49, %v1718_v29  ;;  %v1337_v58 = vsel %vm786_vm6, %v1772_v40, %v1762_v50  ;;  %v1338_v60 = vsel %vm786_vm6, %v1762_v50, %v1763_v32 }
 0x310   :  { %1368 = vmatpush.msrb.mxu0 %v1331_v57  ;;  %1407 = vmatpush.msrb.mxu2 %v1337_v58 }
 0x311   :  { %1427 = vmatpush.msrb.mxu3 %v1338_v60 }
 0x314   :  { %v1766_v61 = vpop.permute.xlu0 %1765 }
 0x315   :  { %v1768_v1 = vunpack.i.h.bf16 %v1766_v61  ;;  %v1767_v2 = vunpack.i.l.bf16 %v1766_v61 }
 0x317   :  { %v1333_v33 = vsel %vm786_vm6, %v1778_v63, %v1767_v2  ;;  %v1334_v4 = vsel %vm786_vm6, %v1767_v2, %v1768_v1 }
 0x318   :  { %1408 = vmatpush.msrb.mxu2 %v1333_v33  ;;  %1428 = vmatpush.msrb.mxu3 %v1334_v4 }
 0x31a   :  { %1409 = vmatpush.msrb.mxu2 %v1329_v28  ;;  %1429 = vmatpush.msrb.mxu3 %v1330_v12 }
 0x31b   :  { %1519 = vmatmul.msk.f32.vlgmr.msrb.gmra.mxu2 %vm1031_vm15, %v1516_v11  ;;  %1520 = vmatmul.msk.f32.vlgmr.msrb.gmra.mxu3 %vm1031_vm15, %v1516_v11 }
 0x31c   :  { %v1786_v59 = vpop.permute.xlu0 %1785 }
 0x31d   :  { %v1788_v14 = vunpack.i.h.bf16 %v1786_v59  ;;  %v1787_v15 = vunpack.i.l.bf16 %v1786_v59 }
 0x31f   :  { %v1327_v30 = vsel %vm786_vm6, %v1793_v3, %v1787_v15  ;;  %v1328_v16 = vsel %vm786_vm6, %v1787_v15, %v1788_v14 }
 0x320   :  { %1369 = vmatpush.msrb.mxu0 %v1327_v30  ;;  %1389 = vmatpush.msrb.mxu1 %v1328_v16 }
 0x321   :  { %1517 = vmatmul.msk.f32.vlgmr.msrb.gmra.mxu0 %vm1031_vm15, %v1516_v11  ;;  %1518 = vmatmul.msk.f32.vlgmr.msrb.gmra.mxu1 %vm1031_vm15, %v1516_v11 }
 0x358   :  { %v910_v27 = vpop.permute.xlu2 %909 }
 0x362   :  { %v1052_v17 = vpop.f32.mrf.mxu0  ;;  %v1072_v13 = vpop.f32.mrf.mxu1 }
 0x363   :  { %v1116_v22 = vmul.f32 %v2217_v25, %v1072_v13  ;;  %v1115_v36 = vmul.f32 %v2214_v24, %v1052_v17 }
 0x365   :  { %v1120_v37 = vadd.f32 %v1116_v22, %v910_v27  ;;  %v1119_v38 = vadd.f32 %v1115_v36, %v910_v27 }
 0x36a   :  { %v1205_v21 = vpop.f32.mrf.mxu0  ;;  %v1225_v62 = vpop.f32.mrf.mxu1 }
 0x36b   :  { %v1269_v48 = vadd.f32 %v1225_v62, %v1120_v37  ;;  %v1268_v53 = vadd.f32 %v1205_v21, %v1119_v38 }
 0x37e   :  { %v1112_v20 = vpop.f32.mrf.mxu3 }
 0x37f   :  { %v1118_v29 = vmul.f32 %v2223_v35, %v1112_v20 }
 0x380   :  { %v1092_v18 = vpop.f32.mrf.mxu2 }
 0x381   :  { %v1117_v52 = vmul.f32 %v2220_v34, %v1092_v18  ;;  %v1122_v47 = vadd.f32 %v1118_v29, %v910_v27 }
 0x383   :  { %v1121_v0 = vadd.f32 %v1117_v52, %v910_v27 }
 0x38e   :  { %v1245_v23 = vpop.f32.mrf.mxu2  ;;  %v1265_v26 = vpop.f32.mrf.mxu3 }
 0x38f   :  { %v1271_v43 = vadd.f32 %v1265_v26, %v1122_v47  ;;  %v1270_v54 = vadd.f32 %v1245_v23, %v1121_v0 }
 0x39e   :  { %v1371_v6 = vpop.f32.mrf.mxu0  ;;  %v1391_v39 = vpop.f32.mrf.mxu1 }
 0x39f   :  { %v1434_v41 = vmul.f32 %v2230_v10, %v1371_v6  ;;  %v1435_v25 = vmul.f32 %v2233_v5, %v1391_v39  ;;  %v1411_v42 = vpop.f32.mrf.mxu2  ;;  %v1431_v7 = vpop.f32.mrf.mxu3 }
 0x3a0   :  { %v1436_v35 = vmul.f32 %v2236_v45, %v1411_v42  ;;  %v1437_v24 = vmul.f32 %v2239_v46, %v1431_v7 }
 0x3a1   :  { %v1439_v34 = vadd.f32 %v1435_v25, %v1269_v48  ;;  %v1438_v10 = vadd.f32 %v1434_v41, %v1268_v53 }
 0x3a2   :  { %v1441_v19 = vadd.f32 %v1437_v24, %v1271_v43  ;;  %v1440_v5 = vadd.f32 %v1436_v35, %v1270_v54 }
 0x3a3   :  { %v1444_v44 = vrot.slane %v1439_v34, 4 }
 0x3a4   :  { %v1450_v55 = vrot.slane %v1441_v19, 4 }
 0x3a5   :  { %v1445_v56 = vsel %vm265_vm1, %v1438_v10, %v1444_v44 }
 0x3a6   :  { %1447 = vst [vmem:[#allocation9] sm:$0xff] %v1445_v56  ;;  %v1451_v45 = vsel %vm265_vm1, %v1440_v5, %v1450_v55 }
 0x3a7   :  { %1454 = vst [vmem:[#allocation9 + $0x8] sm:$0xff] %v1451_v45 }
 0x3a8   :  { %1467 = dma.vmem_to_hbm [thread:$0]  %s1460_s16, 256, %s1462_s19, [#allocation6], %s1875_s26, %s1875_s26, %s1876_s27  }
 0x3a9   :  { %1872 = dma.done.wait [#allocation6], 256  }
 0x3aa   :  { %1873 = vsyncadd [#allocation6], 4294967040 }
 0x3ab   :  { %1472 = vsyncpa [#allocation5], 1 }
 0x3ac   :  { %1473 = vsyncpa [#allocation8], 1 }
 0x3ad   :  { %1474 = vsyncpa [#allocation6], 1 }

</bundles_post_ra>
